<compile_context>
chip_gen: v6e
topology: v6e:2x2x1
jax: 0.10.0
libtpu: 0.0.40
codegen_flags: <defaults>
</compile_context>

<pallas_src>
import functools

import jax
import jax.numpy as jnp
from jax.experimental import pallas as pl
from jax.experimental.pallas import tpu as pltpu

EMB = 20            # embedding dim (nn.Embedding(input_size, 20))
NUM_K = 7           # filter heights 2..8
CH = 3              # conv output channels per height
FEAT = NUM_K * CH   # 21 features into the final Linear
MAX_K = 8           # largest filter height
V_PAD = 128         # vocab padded to a full lane register; last slot = zero pad row
OUT_PAD = 128       # lane-dense output width (real logits in the first out_size lanes)
B_TILE = 8          # sequences per grid step


def _round_up(x, m):
    return (x + m - 1) // m * m


def _cnn_kernel(b_tile, sp,
                idx_ref, emb_ref, wconv_ref, bconv_ref, posb_ref,
                lw_ref, lb_ref, out_ref):
    """Embed + fused 7-filter conv + masked max-pool + Linear + LogSoftmax
    for one block of `b_tile` sequences (sp padded positions each)."""
    n = b_tile * sp

    # --- Embedding lookup in-kernel: one-hot (n, 128) @ table (128, 20) on the MXU.
    idx = idx_ref[...]                                                    # (n, 1) int32
    onehot = (idx == jax.lax.broadcasted_iota(jnp.int32, (n, V_PAD), 1)
              ).astype(jnp.float32)
    e = jnp.dot(onehot, emb_ref[...], preferred_element_type=jnp.float32)  # (n, EMB)

    # --- All 7 conv heights as ONE matmul: sliding 8-tap windows (n,160) @ (160,21).
    # Taps i >= k of each filter are zero in wconv, so windows that run past a
    # sequence (into padding / the next sequence) contribute exactly 0.
    e_pad = jnp.concatenate([e, jnp.zeros((MAX_K, EMB), jnp.float32)], axis=0)
    win = jnp.concatenate([e_pad[i:i + n, :] for i in range(MAX_K)], axis=1)  # (n, 160)
    conv = jnp.dot(win, wconv_ref[...], preferred_element_type=jnp.float32)
    conv = conv + bconv_ref[...]                                          # (n, FEAT)

    # --- Remove invalid positions (additive -1e30 mask, per filter height), then
    # max-pool each sequence.  ReLU commutes with max, so it is applied once on
    # the pooled (b_tile, FEAT) slab — identical to PyTorch's ReLU -> MaxPool1d.
    masked = conv + posb_ref[...]                                         # (n, FEAT)
    pooled = jnp.concatenate(
        [jnp.max(masked[t * sp:(t + 1) * sp, :], axis=0, keepdims=True)
         for t in range(b_tile)], axis=0)                                 # (b_tile, FEAT)
    pooled = jnp.maximum(pooled, 0.0)

    # --- Linear(21 -> out, lane-padded to 128) + LogSoftmax.  Padded bias columns
    # hold -1e30, so padded lanes vanish from the normalisation.
    logits = jnp.dot(pooled, lw_ref[...],
                     preferred_element_type=jnp.float32) + lb_ref[...]    # (b_tile, OUT_PAD)
    m = jnp.max(logits, axis=1, keepdims=True)
    z = logits - m
    lse = jnp.log(jnp.sum(jnp.exp(z), axis=1, keepdims=True))
    out_ref[...] = z - lse


def pack_params(emb, conv_ws, conv_bs, lin_w, lin_b, seq_len, b_tile=B_TILE):
    """Input-independent packing of weights / masks for the kernel.
    Call ONCE per (parameters, seq_len) — hoisted out of the per-call path."""
    assert seq_len >= MAX_K, "all 7 conv filters (k=2..8) need seq_len >= 8"
    vocab = emb.shape[0]
    out_size = lin_w.shape[0]
    assert vocab < V_PAD and out_size <= OUT_PAD
    sp = _round_up(seq_len, 8)

    # Embedding table padded to 128 vocab slots; slot V_PAD-1 stays zero and is
    # used to pad sequences up to sp positions.
    emb_pad = jnp.pad(emb.astype(jnp.float32), ((0, V_PAD - vocab), (0, 0)))

    # Conv filters packed as one (8*20, 21) matrix: row block i = tap i of every
    # filter (zero for taps >= k); column order matches torch.cat((out2,...,out8), 1).
    taps = []
    for k_idx, k in enumerate(range(2, 9)):
        w = conv_ws[k_idx].astype(jnp.float32)             # (3, k, 20)
        w = jnp.pad(w, ((0, 0), (0, MAX_K - k), (0, 0)))   # (3, 8, 20)
        taps.append(jnp.transpose(w, (1, 2, 0)))           # (8, 20, 3)
    w_fused = jnp.concatenate(taps, axis=2).reshape(MAX_K * EMB, FEAT)    # (160, 21)
    b_conv = jnp.concatenate([b.astype(jnp.float32) for b in conv_bs]).reshape(1, FEAT)

    # Additive validity mask: position p is valid for column col iff p <= seq_len - k(col).
    p = jnp.arange(sp)[:, None]
    kcol = 2 + jnp.arange(FEAT)[None, :] // CH
    pos_bias = jnp.where(p <= seq_len - kcol, 0.0, -1e30).astype(jnp.float32)
    pos_bias = jnp.tile(pos_bias, (b_tile, 1))                            # (b_tile*sp, 21)

    # Linear weights lane-padded to 128 output columns; padded bias = -1e30.
    lw_pad = jnp.pad(lin_w.T.astype(jnp.float32), ((0, 0), (0, OUT_PAD - out_size)))
    lb_pad = jnp.concatenate(
        [lin_b.astype(jnp.float32),
         jnp.full((OUT_PAD - out_size,), -1e30, jnp.float32)]).reshape(1, OUT_PAD)

    return emb_pad, w_fused, b_conv, pos_bias, lw_pad, lb_pad


def cnn_forward(idx_batch, packed, *, seq_len, out_size, b_tile=B_TILE):
    """idx_batch: (B, seq_len) int32 letter ids (each row = one lineToTensor sequence).
    Returns (B, out_size) log-probabilities (one CNN.forward per row)."""
    emb_pad, w_fused, b_conv, pos_bias, lw_pad, lb_pad = packed
    B, S = idx_batch.shape
    assert S == seq_len and B % b_tile == 0
    sp = _round_up(S, 8)
    n = b_tile * sp

    # Pad each sequence to sp positions with the zero-embedding pad slot; flatten
    # so the kernel sees a clean (b_tile*sp, 1) sublane slab per grid step.
    idx_pad = jnp.pad(idx_batch.astype(jnp.int32), ((0, 0), (0, sp - S)),
                      constant_values=V_PAD - 1)
    idx_flat = idx_pad.reshape(B * sp, 1)

    def resident(a):  # whole array, same block every step -> stays pinned in VMEM
        return pl.BlockSpec(a.shape, lambda b: (0, 0))

    out = pl.pallas_call(
        functools.partial(_cnn_kernel, b_tile, sp),
        out_shape=jax.ShapeDtypeStruct((B, OUT_PAD), jnp.float32),
        grid=(B // b_tile,),
        in_specs=[
            pl.BlockSpec((n, 1), lambda b: (b, 0)),    # this block's sequence indices
            resident(emb_pad),
            resident(w_fused),
            resident(b_conv),
            resident(pos_bias),
            resident(lw_pad),
            resident(lb_pad),
        ],
        out_specs=pl.BlockSpec((b_tile, OUT_PAD), lambda b: (b, 0)),
        compiler_params=pltpu.CompilerParams(
            dimension_semantics=("parallel",)),        # batch axis -> both TCs on v7x
    )(idx_flat, emb_pad, w_fused, b_conv, pos_bias, lw_pad, lb_pad)

    return out[:, :out_size]


def reference_forward(idx_batch, emb, conv_ws, conv_bs, lin_w, lin_b):
    """Pure-JAX per-sequence mirror of the PyTorch CNN.forward."""
    B, S = idx_batch.shape
    hi = jax.lax.Precision.HIGHEST
    outs = []
    for b in range(B):
        E = emb[idx_batch[b]].astype(jnp.float32)                     # (S, 20)
        feats = []
        for k_idx, k in enumerate(range(2, 9)):
            w, bias = conv_ws[k_idx], conv_bs[k_idx]                  # (3,k,20), (3,)
            P = S - k + 1
            windows = jnp.stack([E[p:p + k] for p in range(P)])       # (P, k, 20)
            vals = jnp.einsum('pkd,ckd->pc', windows, w, precision=hi) + bias  # Conv2d
            feats.append(jnp.max(jnp.maximum(vals, 0.0), axis=0))     # ReLU + MaxPool1d
        feat = jnp.concatenate(feats)                                 # (21,) torch.cat order
        logits = jnp.dot(feat, lin_w.T, precision=hi) + lin_b
        z = logits - jnp.max(logits)
        outs.append(z - jnp.log(jnp.sum(jnp.exp(z))))
    return jnp.stack(outs)


if __name__ == "__main__":
    seq_length, input_size, hidden_size, output_size = 16, 30, 32, 8
    batch = 16                                     # 2 grid steps of B_TILE=8 sequences

    key = jax.random.PRNGKey(0)
    ks = jax.random.split(key, 20)

    # Deterministic synthetic parameters (shapes follow the module's __init__).
    emb = jax.random.normal(ks[0], (input_size, EMB), jnp.float32) * 0.1
    conv_ws, conv_bs = [], []
    for k_idx, k in enumerate(range(2, 9)):
        conv_ws.append(jax.random.normal(ks[1 + k_idx], (CH, k, EMB), jnp.float32) * 0.1)
        conv_bs.append(jax.random.normal(ks[8 + k_idx], (CH,), jnp.float32) * 0.1)
    lin_w = jax.random.normal(ks[15], (output_size, FEAT), jnp.float32) * 0.1
    lin_b = jax.random.normal(ks[16], (output_size,), jnp.float32) * 0.1

    # A batch of letter-index sequences (each row = lineToTensor output, squeezed).
    idx_batch = jax.random.randint(ks[17], (batch, seq_length), 0, input_size, jnp.int32)

    # Hoisted, input-independent packing (done once), then the jitted forward.
    packed = pack_params(emb, conv_ws, conv_bs, lin_w, lin_b, seq_length)
    fwd = jax.jit(functools.partial(cnn_forward, seq_len=seq_length, out_size=output_size))

    out = fwd(idx_batch, packed)
    out = jax.block_until_ready(out)

    ref = reference_forward(idx_batch, emb, conv_ws, conv_bs, lin_w, lin_b)
    assert out.shape == (batch, output_size), out.shape
    assert jnp.allclose(out, ref, atol=1e-3, rtol=1e-3), (out, ref)
    print("KERNEL_OK")
</pallas_src>

<mosaic_0001>
module attributes {stable_mosaic.version = 11 : i64} {
  func.func @_cnn_kernel(%arg0: i32, %arg1: memref<128x1xi32, #tpu.memory_space<vmem>>, %arg2: memref<128x20xf32, #tpu.memory_space<vmem>>, %arg3: memref<160x21xf32, #tpu.memory_space<vmem>>, %arg4: memref<1x21xf32, #tpu.memory_space<vmem>>, %arg5: memref<128x21xf32, #tpu.memory_space<vmem>>, %arg6: memref<21x128xf32, #tpu.memory_space<vmem>>, %arg7: memref<1x128xf32, #tpu.memory_space<vmem>>, %arg8: memref<8x128xf32, #tpu.memory_space<vmem>>) attributes {dimension_semantics = [#tpu.dimension_semantics<parallel>], iteration_bounds = array<i64: 2>, scalar_prefetch = 0 : i64, scratch_operands = 0 : i64, tpu.core_type = #tpu.core_type<tc>, window_params = [{transform_indices = @transform_0, window_bounds = array<i64: 128, 1>}, {pipeline_mode = #tpu.pipeline_mode<synchronous>, transform_indices = @transform_1, window_bounds = array<i64: 128, 20>}, {pipeline_mode = #tpu.pipeline_mode<synchronous>, transform_indices = @transform_2, window_bounds = array<i64: 160, 21>}, {pipeline_mode = #tpu.pipeline_mode<synchronous>, transform_indices = @transform_3, window_bounds = array<i64: 1, 21>}, {pipeline_mode = #tpu.pipeline_mode<synchronous>, transform_indices = @transform_4, window_bounds = array<i64: 128, 21>}, {pipeline_mode = #tpu.pipeline_mode<synchronous>, transform_indices = @transform_5, window_bounds = array<i64: 21, 128>}, {pipeline_mode = #tpu.pipeline_mode<synchronous>, transform_indices = @transform_6, window_bounds = array<i64: 1, 128>}, {transform_indices = @transform_7, window_bounds = array<i64: 8, 128>}]} {
    %c0 = arith.constant 0 : index
    %c0_0 = arith.constant 0 : index
    %0 = vector.load %arg1[%c0, %c0_0] : memref<128x1xi32, #tpu.memory_space<vmem>>, vector<128x1xi32>
    %1 = tpu.iota {dimensions = array<i32: 1>} : vector<128x128xi32>
    %2 = vector.broadcast %0 : vector<128x1xi32> to vector<128x128xi32>
    %3 = arith.cmpi eq, %2, %1 : vector<128x128xi32>
    %4 = arith.extui %3 : vector<128x128xi1> to vector<128x128xi32>
    %5 = arith.sitofp %4 : vector<128x128xi32> to vector<128x128xf32>
    %c0_1 = arith.constant 0 : index
    %c0_2 = arith.constant 0 : index
    %6 = vector.load %arg2[%c0_1, %c0_2] : memref<128x20xf32, #tpu.memory_space<vmem>>, vector<128x20xf32>
    %cst = arith.constant dense<0.000000e+00> : vector<128x20xf32>
    %7 = tpu.matmul %5, %6, %cst {dimension_numbers = #tpu.dot_dimension_numbers<[1], [0], [0], [1], [0, 0, 1, 1], [], []>} : vector<128x128xf32>, vector<128x20xf32>, vector<128x20xf32> -> vector<128x20xf32>
    %cst_3 = arith.constant 0.000000e+00 : f32
    %8 = vector.broadcast %cst_3 : f32 to vector<8x20xf32>
    %9 = tpu.concatenate %7, %8 in 0 : vector<128x20xf32>, vector<8x20xf32> -> vector<136x20xf32>
    %10 = vector.extract_strided_slice %9 {offsets = [0, 0], sizes = [128, 20], strides = [1, 1]} : vector<136x20xf32> to vector<128x20xf32>
    %11 = vector.extract_strided_slice %9 {offsets = [1, 0], sizes = [128, 20], strides = [1, 1]} : vector<136x20xf32> to vector<128x20xf32>
    %12 = vector.extract_strided_slice %9 {offsets = [2, 0], sizes = [128, 20], strides = [1, 1]} : vector<136x20xf32> to vector<128x20xf32>
    %13 = vector.extract_strided_slice %9 {offsets = [3, 0], sizes = [128, 20], strides = [1, 1]} : vector<136x20xf32> to vector<128x20xf32>
    %14 = vector.extract_strided_slice %9 {offsets = [4, 0], sizes = [128, 20], strides = [1, 1]} : vector<136x20xf32> to vector<128x20xf32>
    %15 = vector.extract_strided_slice %9 {offsets = [5, 0], sizes = [128, 20], strides = [1, 1]} : vector<136x20xf32> to vector<128x20xf32>
    %16 = vector.extract_strided_slice %9 {offsets = [6, 0], sizes = [128, 20], strides = [1, 1]} : vector<136x20xf32> to vector<128x20xf32>
    %17 = vector.extract_strided_slice %9 {offsets = [7, 0], sizes = [128, 20], strides = [1, 1]} : vector<136x20xf32> to vector<128x20xf32>
    %18 = tpu.concatenate %10, %11, %12, %13, %14, %15, %16, %17 in 1 : vector<128x20xf32>, vector<128x20xf32>, vector<128x20xf32>, vector<128x20xf32>, vector<128x20xf32>, vector<128x20xf32>, vector<128x20xf32>, vector<128x20xf32> -> vector<128x160xf32>
    %c0_4 = arith.constant 0 : index
    %c0_5 = arith.constant 0 : index
    %19 = vector.load %arg3[%c0_4, %c0_5] : memref<160x21xf32, #tpu.memory_space<vmem>>, vector<160x21xf32>
    %cst_6 = arith.constant dense<0.000000e+00> : vector<128x21xf32>
    %20 = tpu.matmul %18, %19, %cst_6 {dimension_numbers = #tpu.dot_dimension_numbers<[1], [0], [0], [1], [0, 0, 1, 1], [], []>} : vector<128x160xf32>, vector<160x21xf32>, vector<128x21xf32> -> vector<128x21xf32>
    %c0_7 = arith.constant 0 : index
    %c0_8 = arith.constant 0 : index
    %21 = vector.load %arg4[%c0_7, %c0_8] : memref<1x21xf32, #tpu.memory_space<vmem>>, vector<1x21xf32>
    %22 = vector.broadcast %21 : vector<1x21xf32> to vector<128x21xf32>
    %23 = arith.addf %20, %22 : vector<128x21xf32>
    %c0_9 = arith.constant 0 : index
    %c0_10 = arith.constant 0 : index
    %24 = vector.load %arg5[%c0_9, %c0_10] : memref<128x21xf32, #tpu.memory_space<vmem>>, vector<128x21xf32>
    %25 = arith.addf %23, %24 : vector<128x21xf32>
    %26 = vector.extract_strided_slice %25 {offsets = [0, 0], sizes = [16, 21], strides = [1, 1]} : vector<128x21xf32> to vector<16x21xf32>
    %cst_11 = arith.constant dense<0xFF800000> : vector<21xf32>
    %27 = vector.multi_reduction <maximumf>, %26, %cst_11 [0] : vector<16x21xf32> to vector<21xf32>
    %28 = vector.shape_cast %27 : vector<21xf32> to vector<1x21xf32>
    %29 = vector.extract_strided_slice %25 {offsets = [16, 0], sizes = [16, 21], strides = [1, 1]} : vector<128x21xf32> to vector<16x21xf32>
    %cst_12 = arith.constant dense<0xFF800000> : vector<21xf32>
    %30 = vector.multi_reduction <maximumf>, %29, %cst_12 [0] : vector<16x21xf32> to vector<21xf32>
    %31 = vector.shape_cast %30 : vector<21xf32> to vector<1x21xf32>
    %32 = vector.extract_strided_slice %25 {offsets = [32, 0], sizes = [16, 21], strides = [1, 1]} : vector<128x21xf32> to vector<16x21xf32>
    %cst_13 = arith.constant dense<0xFF800000> : vector<21xf32>
    %33 = vector.multi_reduction <maximumf>, %32, %cst_13 [0] : vector<16x21xf32> to vector<21xf32>
    %34 = vector.shape_cast %33 : vector<21xf32> to vector<1x21xf32>
    %35 = vector.extract_strided_slice %25 {offsets = [48, 0], sizes = [16, 21], strides = [1, 1]} : vector<128x21xf32> to vector<16x21xf32>
    %cst_14 = arith.constant dense<0xFF800000> : vector<21xf32>
    %36 = vector.multi_reduction <maximumf>, %35, %cst_14 [0] : vector<16x21xf32> to vector<21xf32>
    %37 = vector.shape_cast %36 : vector<21xf32> to vector<1x21xf32>
    %38 = vector.extract_strided_slice %25 {offsets = [64, 0], sizes = [16, 21], strides = [1, 1]} : vector<128x21xf32> to vector<16x21xf32>
    %cst_15 = arith.constant dense<0xFF800000> : vector<21xf32>
    %39 = vector.multi_reduction <maximumf>, %38, %cst_15 [0] : vector<16x21xf32> to vector<21xf32>
    %40 = vector.shape_cast %39 : vector<21xf32> to vector<1x21xf32>
    %41 = vector.extract_strided_slice %25 {offsets = [80, 0], sizes = [16, 21], strides = [1, 1]} : vector<128x21xf32> to vector<16x21xf32>
    %cst_16 = arith.constant dense<0xFF800000> : vector<21xf32>
    %42 = vector.multi_reduction <maximumf>, %41, %cst_16 [0] : vector<16x21xf32> to vector<21xf32>
    %43 = vector.shape_cast %42 : vector<21xf32> to vector<1x21xf32>
    %44 = vector.extract_strided_slice %25 {offsets = [96, 0], sizes = [16, 21], strides = [1, 1]} : vector<128x21xf32> to vector<16x21xf32>
    %cst_17 = arith.constant dense<0xFF800000> : vector<21xf32>
    %45 = vector.multi_reduction <maximumf>, %44, %cst_17 [0] : vector<16x21xf32> to vector<21xf32>
    %46 = vector.shape_cast %45 : vector<21xf32> to vector<1x21xf32>
    %47 = vector.extract_strided_slice %25 {offsets = [112, 0], sizes = [16, 21], strides = [1, 1]} : vector<128x21xf32> to vector<16x21xf32>
    %cst_18 = arith.constant dense<0xFF800000> : vector<21xf32>
    %48 = vector.multi_reduction <maximumf>, %47, %cst_18 [0] : vector<16x21xf32> to vector<21xf32>
    %49 = vector.shape_cast %48 : vector<21xf32> to vector<1x21xf32>
    %50 = tpu.concatenate %28, %31, %34, %37, %40, %43, %46, %49 in 0 : vector<1x21xf32>, vector<1x21xf32>, vector<1x21xf32>, vector<1x21xf32>, vector<1x21xf32>, vector<1x21xf32>, vector<1x21xf32>, vector<1x21xf32> -> vector<8x21xf32>
    %cst_19 = arith.constant 0.000000e+00 : f32
    %51 = vector.broadcast %cst_19 : f32 to vector<8x21xf32>
    %52 = arith.maximumf %50, %51 : vector<8x21xf32>
    %c0_20 = arith.constant 0 : index
    %c0_21 = arith.constant 0 : index
    %53 = vector.load %arg6[%c0_20, %c0_21] : memref<21x128xf32, #tpu.memory_space<vmem>>, vector<21x128xf32>
    %cst_22 = arith.constant dense<0.000000e+00> : vector<8x128xf32>
    %54 = tpu.matmul %52, %53, %cst_22 {dimension_numbers = #tpu.dot_dimension_numbers<[1], [0], [0], [1], [0, 0, 1, 1], [], []>} : vector<8x21xf32>, vector<21x128xf32>, vector<8x128xf32> -> vector<8x128xf32>
    %c0_23 = arith.constant 0 : index
    %c0_24 = arith.constant 0 : index
    %55 = vector.load %arg7[%c0_23, %c0_24] : memref<1x128xf32, #tpu.memory_space<vmem>>, vector<1x128xf32>
    %56 = vector.broadcast %55 : vector<1x128xf32> to vector<8x128xf32>
    %57 = arith.addf %54, %56 : vector<8x128xf32>
    %cst_25 = arith.constant dense<0xFF800000> : vector<8xf32>
    %58 = vector.multi_reduction <maximumf>, %57, %cst_25 [1] : vector<8x128xf32> to vector<8xf32>
    %59 = vector.shape_cast %58 : vector<8xf32> to vector<8x1xf32>
    %60 = vector.broadcast %59 : vector<8x1xf32> to vector<8x128xf32>
    %61 = arith.subf %57, %60 : vector<8x128xf32>
    %62 = math.exp %61 : vector<8x128xf32>
    %cst_26 = arith.constant dense<0.000000e+00> : vector<8xf32>
    %63 = vector.multi_reduction <add>, %62, %cst_26 [1] : vector<8x128xf32> to vector<8xf32>
    %64 = vector.shape_cast %63 : vector<8xf32> to vector<8x1xf32>
    %65 = math.log %64 : vector<8x1xf32>
    %66 = vector.broadcast %65 : vector<8x1xf32> to vector<8x128xf32>
    %67 = arith.subf %61, %66 : vector<8x128xf32>
    %c0_27 = arith.constant 0 : index
    %c0_28 = arith.constant 0 : index
    %68 = vector.load %arg8[%c0_27, %c0_28] : memref<8x128xf32, #tpu.memory_space<vmem>>, vector<8x128xf32>
    tpu.vector_store %arg8[%c0_27, %c0_28], %67 {strides = array<i32>} : memref<8x128xf32, #tpu.memory_space<vmem>>, vector<8x128xf32>,
    return
  }
  func.func @transform_0(%arg0: i32) -> (i32, i32) {
    %c0_i32 = arith.constant 0 : i32
    %c0_i32_0 = arith.constant 0 : i32
    return %arg0, %c0_i32 : i32, i32
  }
  func.func @transform_1(%arg0: i32) -> (i32, i32) {
    %c0_i32 = arith.constant 0 : i32
    %c0_i32_0 = arith.constant 0 : i32
    %c0_i32_1 = arith.constant 0 : i32
    return %c0_i32, %c0_i32_0 : i32, i32
  }
  func.func @transform_2(%arg0: i32) -> (i32, i32) {
    %c0_i32 = arith.constant 0 : i32
    %c0_i32_0 = arith.constant 0 : i32
    %c0_i32_1 = arith.constant 0 : i32
    return %c0_i32, %c0_i32_0 : i32, i32
  }
  func.func @transform_3(%arg0: i32) -> (i32, i32) {
    %c0_i32 = arith.constant 0 : i32
    %c0_i32_0 = arith.constant 0 : i32
    %c0_i32_1 = arith.constant 0 : i32
    return %c0_i32, %c0_i32_0 : i32, i32
  }
  func.func @transform_4(%arg0: i32) -> (i32, i32) {
    %c0_i32 = arith.constant 0 : i32
    %c0_i32_0 = arith.constant 0 : i32
    %c0_i32_1 = arith.constant 0 : i32
    return %c0_i32, %c0_i32_0 : i32, i32
  }
  func.func @transform_5(%arg0: i32) -> (i32, i32) {
    %c0_i32 = arith.constant 0 : i32
    %c0_i32_0 = arith.constant 0 : i32
    %c0_i32_1 = arith.constant 0 : i32
    return %c0_i32, %c0_i32_0 : i32, i32
  }
  func.func @transform_6(%arg0: i32) -> (i32, i32) {
    %c0_i32 = arith.constant 0 : i32
    %c0_i32_0 = arith.constant 0 : i32
    %c0_i32_1 = arith.constant 0 : i32
    return %c0_i32, %c0_i32_0 : i32, i32
  }
  func.func @transform_7(%arg0: i32) -> (i32, i32) {
    %c0_i32 = arith.constant 0 : i32
    %c0_i32_0 = arith.constant 0 : i32
    return %arg0, %c0_i32 : i32, i32
  }
}

</mosaic_0001>

<bundles_post_ra>
// kernel: cnn_forward.1
= control target key start
LH: loop header
LB: loop body
LE: loop exit
PB: predicated region body
PF: predicated region fallthrough
CT: control target
= control target key end

     0   :  { %s2235_s24 = smov 0   ;;  %s3093_s0 = inlined_call_operand.vmem [shape: s32[256,1], index: 0, kind: input, shape index: {}]   ;;  %s3094_s1 = inlined_call_operand.vmem [shape: f32[128,20], index: 1, kind: input, shape index: {}]   ;;  %s3095_s2 = inlined_call_operand.vmem [shape: f32[160,21], index: 2, kind: input, shape index: {}]   ;;  %s3096_s3 = inlined_call_operand.vmem [shape: f32[1,21], index: 3, kind: input, shape index: {}]   ;;  %s3097_s4 = inlined_call_operand.vmem [shape: f32[128,21], index: 4, kind: input, shape index: {}]   ;;  %s3098_s5 = inlined_call_operand.vmem [shape: f32[21,128], index: 5, kind: input, shape index: {}]   ;;  %s3099_s6 = inlined_call_operand.vmem [shape: f32[1,128], index: 6, kind: input, shape index: {}]   ;;  %s3100_s7 = inlined_call_operand.vmem [shape: f32[16,128], index: 7, kind: output, shape index: {}]  }
   0x1 LB: > { %s2241_s25 = sadd.s32 4294967295, %s2182_s24   ;;  %p1752_p0 = scmp.ge.s32.totalorder %s2182_s24, 1  ;;  %s2182_s24 = sphi %s2235_s24, %s17_s24  }
   0x2   : > { %p238_p1 = scmp.lt.s32.totalorder %s2182_s24, 3 }
   0x4   : > { %p239_p2 = pnand %p1752_p0, %p238_p1 }
   0x5   : > { %s1753_s26 = sshll.u32 (!%p239_p2), %s2241_s25, 4  ;;  %s2188_s27 = smov (!%p239_p2), 120  }
   0x6   : > { %242 = sbr.rel (%p239_p2) target bundleno = 1323 (0x52b), region = 48  ;;  %p270_p3 = scmp.lt.s32.totalorder (!%p239_p2), %s1753_s26, 31 }
   0x7   : > { %s2189_s16 = smov (!%p239_p2), 40   ;;  %s2190_s17 = smov (!%p239_p2), 20  }
   0x8   : > { %s2191_s21 = smov (!%p239_p2), 80   ;;  %s2192_s22 = smov (!%p239_p2), 60  }
   0x9   : > { %s2193_s23 = smov (!%p239_p2), 100   ;;  %p275_p4 = scmp.lt.s32.totalorder (!%p239_p2), %s2241_s25, 1 }
   0xb   : > { %v408_v0 = vld [vmem:[%s3094_s1 + $0x78] sm:$0xff]  ;;  %v2184_v1 = vmov 0   ;;  %v407_v2 = vld [vmem:[%s3094_s1 + $0x70] sm:$0xff]  ;;  %s3102_s26 = smov (!%p270_p3, %s1753_s26), 31  ;;  %v406_v3 = vld [vmem:[%s3094_s1 + $0x68] sm:$0xff]  ;;  %v295_v33 = vlaneseq  ;;  %v2185_v37 = vmov 1.0  }
   0xc   : > { %1971 = vset.pattern.permute.xlu1 %v2184_v1  ;;  %1970 = vset.pattern.permute.xlu0 %v2184_v1  ;;  %s1754_s10 = sshll.u32 %s3102_s26, 3  ;;  %v405_v4 = vld [vmem:[%s3094_s1 + $0x60] sm:$0xff]  ;;  %v404_v7 = vld [vmem:[%s3094_s1 + $0x58] sm:$0xff]  ;;  %v403_v10 = vld [vmem:[%s3094_s1 + $0x50] sm:$0xff]  ;;  %v2186_v52 = vmov 0.0   ;;  %s2187_s26 = smov 12  }
   0xd   : > { %1846 = vmatprep.subr.mxu0 %v408_v0  ;;  %s2258_s13 = scalar_lea.vmem %s3093_s0, %s1754_s10  ;;  %v402_v13 = vld [vmem:[%s3094_s1 + $0x48] sm:$0xff]  ;;  %v401_v14 = vld [vmem:[%s3094_s1 + $0x40] sm:$0xff]  ;;  %v400_v17 = vld [vmem:[%s3094_s1 + $0x38] sm:$0xff]  ;;  %v296_v34 = vand.u32 127, %v295_v33  ;;  %1911 = vmatprep.subr.mxu1 %v2186_v52  ;;  %s3104_s25 = smov (!%p275_p4, %s2241_s25), 1 }
   0xe   : > { %1847 = vmatpush3.msra.mxu0 %v408_v0  ;;  %v281_v5 = vld [vmem:[%s2258_s13 + $0x10] sm:$0xff]  ;;  %v279_v6 = vld [vmem:[%s2258_s13] sm:$0xff]  ;;  %v282_v8 = vld [vmem:[%s2258_s13 + $0x18] sm:$0xff] }
   0xf   : > { %1848 = vmatprep.subr.mxu0 %v407_v2  ;;  %304 = vperm.xlu1 %1971, %v281_v5   ;;  %v280_v9 = vld [vmem:[%s2258_s13 + $0x8] sm:$0xff]  ;;  %v283_v12 = vld [vmem:[%s2258_s13 + $0x20] sm:$0xff]  ;;  %v286_v15 = vld [vmem:[%s2258_s13 + $0x38] sm:$0xff] }
  0x10   : > { %1849 = vmatpush3.msra.mxu0 %v407_v2  ;;  %298 = vperm.xlu0 %1970, %v279_v6   ;;  %v284_v11 = vld [vmem:[%s2258_s13 + $0x28] sm:$0xff]  ;;  %v285_v16 = vld [vmem:[%s2258_s13 + $0x30] sm:$0xff]  ;;  %v287_v19 = vld [vmem:[%s2258_s13 + $0x40] sm:$0xff] }
  0x11   : > { %1850 = vmatprep.subr.mxu0 %v406_v3  ;;  %v288_v18 = vld [vmem:[%s2258_s13 + $0x48] sm:$0xff]  ;;  %v399_v20 = vld [vmem:[%s3094_s1 + $0x30] sm:$0xff]  ;;  %v290_v22 = vld [vmem:[%s2258_s13 + $0x58] sm:$0xff] }
  0x12   : > { %1851 = vmatpush3.msra.mxu0 %v406_v3  ;;  %v398_v21 = vld [vmem:[%s3094_s1 + $0x28] sm:$0xff]  ;;  %v289_v23 = vld [vmem:[%s2258_s13 + $0x50] sm:$0xff]  ;;  %v397_v24 = vld [vmem:[%s3094_s1 + $0x20] sm:$0xff] }
  0x13   : > { %1852 = vmatprep.subr.mxu0 %v405_v4  ;;  %307 = vperm.xlu1 %1971, %v282_v8   ;;  %v292_v25 = vld [vmem:[%s2258_s13 + $0x68] sm:$0xff]  ;;  %v291_v26 = vld [vmem:[%s2258_s13 + $0x60] sm:$0xff]  ;;  %v396_v27 = vld [vmem:[%s3094_s1 + $0x18] sm:$0xff] }
  0x14   : > { %1853 = vmatpush3.msra.mxu0 %v405_v4  ;;  %301 = vperm.xlu0 %1970, %v280_v9   ;;  %v395_v28 = vld [vmem:[%s3094_s1 + $0x10] sm:$0xff]  ;;  %v294_v29 = vld [vmem:[%s2258_s13 + $0x78] sm:$0xff]  ;;  %v394_v31 = vld [vmem:[%s3094_s1 + $0x8] sm:$0xff] }
  0x15   : > { %1854 = vmatprep.subr.mxu0 %v404_v7  ;;  %v293_v30 = vld [vmem:[%s2258_s13 + $0x70] sm:$0xff]  ;;  %v393_v32 = vld [vmem:[%s3094_s1] sm:$0xff]  ;;  %v1279_v53 = vld [vmem:[%s3095_s2 + $0x78] sm:$0xff] }
  0x16   : > { %1855 = vmatpush3.msra.mxu0 %v404_v7  ;;  %v1278_v54 = vld [vmem:[%s3095_s2 + $0x70] sm:$0xff]  ;;  %1931 = vmatpush1.msra.mxu1 %v1279_v53  ;;  %v1277_v55 = vld [vmem:[%s3095_s2 + $0x68] sm:$0xff]  ;;  %v1276_v56 = vld [vmem:[%s3095_s2 + $0x60] sm:$0xff] }
  0x17   : > { %1856 = vmatprep.subr.mxu0 %v403_v10  ;;  %313 = vperm.xlu1 %1971, %v284_v11   ;;  %v1275_v57 = vld [vmem:[%s3095_s2 + $0x58] sm:$0xff]  ;;  %v1274_v58 = vld [vmem:[%s3095_s2 + $0x50] sm:$0xff]  ;;  %v1273_v59 = vld [vmem:[%s3095_s2 + $0x48] sm:$0xff] }
  0x18   : > { %1857 = vmatpush3.msra.mxu0 %v403_v10  ;;  %310 = vperm.xlu0 %1970, %v283_v12   ;;  %v1272_v60 = vld [vmem:[%s3095_s2 + $0x40] sm:$0xff]  ;;  %v1271_v61 = vld [vmem:[%s3095_s2 + $0x38] sm:$0xff]  ;;  %v1270_v62 = vld [vmem:[%s3095_s2 + $0x30] sm:$0xff] }
  0x19   : > { %1858 = vmatprep.subr.mxu0 %v402_v13  ;;  %1912 = vmatprep.subr.mxu1 %v2186_v52  ;;  %v1269_v63 = vld [vmem:[%s3095_s2 + $0x28] sm:$0xff]  ;;  %v1268_v1 = vld [vmem:[%s3095_s2 + $0x20] sm:$0xff]  ;;  %v1267_v3 = vld [vmem:[%s3095_s2 + $0x18] sm:$0xff] }
  0x1a   : > { %1859 = vmatpush3.msra.mxu0 %v402_v13  ;;  %1932 = vmatpush1.msra.mxu1 %v1278_v54 }
  0x1b   : > { %1860 = vmatprep.subr.mxu0 %v401_v14  ;;  %319 = vperm.xlu1 %1971, %v286_v15  }
  0x1c   : > { %316 = vperm.xlu0 %1970, %v285_v16   ;;  %1861 = vmatpush3.msra.mxu0 %v401_v14  ;;  %v1266_v14 = vld [vmem:[%s3095_s2 + $0x10] sm:$0xff]  ;;  %v1265_v16 = vld [vmem:[%s3095_s2 + $0x8] sm:$0xff] }
  0x1d   : > { %1862 = vmatprep.subr.mxu0 %v400_v17  ;;  %1913 = vmatprep.subr.mxu1 %v2186_v52 }
  0x1e   : > { %1863 = vmatpush3.msra.mxu0 %v400_v17  ;;  %1933 = vmatpush1.msra.mxu1 %v1277_v55 }
  0x1f   : > { %325 = vperm.xlu1 %1971, %v288_v18   ;;  %1864 = vmatprep.subr.mxu0 %v399_v20 }
  0x20   : > { %322 = vperm.xlu0 %1970, %v287_v19   ;;  %1865 = vmatpush3.msra.mxu0 %v399_v20 }
  0x21   : > { %1866 = vmatprep.subr.mxu0 %v398_v21  ;;  %1914 = vmatprep.subr.mxu1 %v2186_v52 }
  0x22   : > { %1867 = vmatpush3.msra.mxu0 %v398_v21  ;;  %1934 = vmatpush1.msra.mxu1 %v1276_v56 }
  0x23   : > { %331 = vperm.xlu1 %1971, %v290_v22   ;;  %1868 = vmatprep.subr.mxu0 %v397_v24 }
  0x24   : > { %328 = vperm.xlu0 %1970, %v289_v23   ;;  %1869 = vmatpush3.msra.mxu0 %v397_v24 }
  0x25   : > { %1870 = vmatprep.subr.mxu0 %v396_v27  ;;  %1915 = vmatprep.subr.mxu1 %v2186_v52 }
  0x26   : > { %1871 = vmatpush3.msra.mxu0 %v396_v27  ;;  %1935 = vmatpush1.msra.mxu1 %v1275_v57 }
  0x27   : > { %337 = vperm.xlu1 %1971, %v292_v25   ;;  %1872 = vmatprep.subr.mxu0 %v395_v28 }
  0x28   : > { %334 = vperm.xlu0 %1970, %v291_v26   ;;  %1873 = vmatpush3.msra.mxu0 %v395_v28  ;;  %v1264_v28 = vld [vmem:[%s3095_s2] sm:$0xff] }
  0x29   : > { %1874 = vmatprep.subr.mxu0 %v394_v31  ;;  %1916 = vmatprep.subr.mxu1 %v2186_v52 }
  0x2a   : > { %1875 = vmatpush3.msra.mxu0 %v394_v31  ;;  %1936 = vmatpush1.msra.mxu1 %v1274_v58 }
  0x2b   : > { %343 = vperm.xlu1 %1971, %v294_v29   ;;  %1876 = vmatprep.subr.mxu0 %v393_v32 }
  0x2c   : > { %340 = vperm.xlu0 %1970, %v293_v30   ;;  %1877 = vmatpush3.msra.mxu0 %v393_v32 }
  0x2d   : > { %1340 = vmatprep.subr.mxu0 %v2186_v52  ;;  %1917 = vmatprep.subr.mxu1 %v2186_v52 }
  0x2e   : > { %1937 = vmatpush1.msra.mxu1 %v1273_v59 }
  0x2f   : > { %1918 = vmatprep.subr.mxu1 %v2186_v52 }
  0x30   : > { %1938 = vmatpush1.msra.mxu1 %v1272_v60 }
  0x31   : > { %1919 = vmatprep.subr.mxu1 %v2186_v52 }
  0x32   : > { %1939 = vmatpush1.msra.mxu1 %v1271_v61 }
  0x33   : > { %1920 = vmatprep.subr.mxu1 %v2186_v52 }
  0x34   : > { %1940 = vmatpush1.msra.mxu1 %v1270_v62 }
  0x35   : > { %1921 = vmatprep.subr.mxu1 %v2186_v52 }
  0x36   : > { %1941 = vmatpush1.msra.mxu1 %v1269_v63 }
  0x37   : > { %1922 = vmatprep.subr.mxu1 %v2186_v52 }
  0x38   : > { %1942 = vmatpush1.msra.mxu1 %v1268_v1 }
  0x39   : > { %1923 = vmatprep.subr.mxu1 %v2186_v52 }
  0x3a   : > { %1943 = vmatpush1.msra.mxu1 %v1267_v3 }
  0x3b   : > { %1924 = vmatprep.subr.mxu1 %v2186_v52 }
  0x3c   : > { %1944 = vmatpush1.msra.mxu1 %v1266_v14 }
  0x3d   : > { %1925 = vmatprep.subr.mxu1 %v2186_v52 }
  0x3e   : > { %1945 = vmatpush1.msra.mxu1 %v1265_v16 }
  0x3f   : > { %1926 = vmatprep.subr.mxu1 %v2186_v52 }
  0x40   : > { %1946 = vmatpush1.msra.mxu1 %v1264_v28 }
  0x41   : > { %1927 = vmatprep.subr.mxu1 %v2186_v52 }
  0x8a   : > { %v305_v35 = vpop.permute.xlu1 %304 }
  0x8b   : > { %v299_v36 = vpop.permute.xlu0 %298  ;;  %vm347_vm1 = vcmp.eq.s32.totalorder %v305_v35, %v296_v34 }
  0x8c   : > { %vm345_vm0 = vcmp.eq.s32.totalorder %v299_v36, %v296_v34 }
  0x8d   : > { %1878 = vmatprep.mubr.msk.f32.mxu0 %vm345_vm0, %v2185_v37  ;;  %vm1063_vm0 = vcmask 1040384  }
  0x8e   : > { %v308_v38 = vpop.permute.xlu1 %307 }
  0x8f   : > { %v302_v39 = vpop.permute.xlu0 %301  ;;  %vm348_vm3 = vcmp.eq.s32.totalorder %v308_v38, %v296_v34 }
  0x90   : > { %vm346_vm2 = vcmp.eq.s32.totalorder %v302_v39, %v296_v34 }
  0x91   : > { %1879 = vmatmul.mubr.msk.f32.vlgmr.msra.gmra.mxu0 %vm346_vm2, %v2185_v37  ;;  %vm653_vm2 = vcmask 1045504  }
  0x92   : > { %1881 = vmatprep.mubr.msk.f32.mxu0 %vm347_vm1, %v2185_v37  ;;  %v314_v40 = vpop.permute.xlu1 %313  ;;  %1341 = vmatpush1.msra.mxu0 %v1279_v53  ;;  %vm981_vm1 = vcmask 1041408  }
  0x93   : > { %v311_v41 = vpop.permute.xlu0 %310  ;;  %vm350_vm5 = vcmp.eq.s32.totalorder %v314_v40, %v296_v34  ;;  %1342 = vmatprep.subr.mxu0 %v2186_v52 }
  0x94   : > { %vm349_vm4 = vcmp.eq.s32.totalorder %v311_v41, %v296_v34  ;;  %1343 = vmatpush1.msra.mxu0 %v1278_v54 }
  0x95   : > { %1882 = vmatmul.mubr.msk.f32.gmra.mxu0 %vm348_vm3, %v2185_v37  ;;  %1344 = vmatprep.subr.mxu0 %v2186_v52  ;;  %vm571_vm3 = vcmask 1046528  }
  0x96   : > { %1884 = vmatprep.mubr.msk.f32.mxu0 %vm349_vm4, %v2185_v37  ;;  %v320_v42 = vpop.permute.xlu1 %319  ;;  %1345 = vmatpush1.msra.mxu0 %v1277_v55  ;;  %vm817_vm4 = vcmask 1043456  }
  0x97   : > { %v317_v43 = vpop.permute.xlu0 %316  ;;  %vm352_vm7 = vcmp.eq.s32.totalorder %v320_v42, %v296_v34  ;;  %1346 = vmatprep.subr.mxu0 %v2186_v52 }
  0x98   : > { %vm351_vm6 = vcmp.eq.s32.totalorder %v317_v43, %v296_v34  ;;  %1347 = vmatpush1.msra.mxu0 %v1276_v56 }
  0x99   : > { %1885 = vmatmul.mubr.msk.f32.gmra.mxu0 %vm350_vm5, %v2185_v37  ;;  %1348 = vmatprep.subr.mxu0 %v2186_v52  ;;  %vm735_vm5 = vcmask 1044480  }
  0x9a   : > { %1887 = vmatprep.mubr.msk.f32.mxu0 %vm351_vm6, %v2185_v37  ;;  %v326_v44 = vpop.permute.xlu1 %325  ;;  %1349 = vmatpush1.msra.mxu0 %v1275_v57  ;;  %vm899_vm6 = vcmask 1042432  }
  0x9b   : > { %v323_v45 = vpop.permute.xlu0 %322  ;;  %vm354_vm9 = vcmp.eq.s32.totalorder %v326_v44, %v296_v34  ;;  %1350 = vmatprep.subr.mxu0 %v2186_v52 }
  0x9c   : > { %vm353_vm8 = vcmp.eq.s32.totalorder %v323_v45, %v296_v34  ;;  %1351 = vmatpush1.msra.mxu0 %v1274_v58  ;;  %v1282_v45 = vld [vmem:[%s3095_s2 + $0x90] sm:$0xff] }
  0x9d   : > { %1888 = vmatmul.mubr.msk.f32.gmra.mxu0 %vm352_vm7, %v2185_v37  ;;  %1352 = vmatprep.subr.mxu0 %v2186_v52  ;;  %vm1247_vm7 = vcmask 97280  }
  0x9e   : > { %1890 = vmatprep.mubr.msk.f32.mxu0 %vm353_vm8, %v2185_v37  ;;  %v332_v46 = vpop.permute.xlu1 %331  ;;  %1353 = vmatpush1.msra.mxu0 %v1273_v59  ;;  %vm1291_vm8 = vcmask 261120  }
  0x9f   : > { %v329_v47 = vpop.permute.xlu0 %328  ;;  %vm356_vm11 = vcmp.eq.s32.totalorder %v332_v46, %v296_v34  ;;  %1354 = vmatprep.subr.mxu0 %v2186_v52 }
  0xa0   : > { %vm355_vm10 = vcmp.eq.s32.totalorder %v329_v47, %v296_v34  ;;  %1355 = vmatpush1.msra.mxu0 %v1272_v60  ;;  %v1280_v60 = vld [vmem:[%s3095_s2 + $0x80] sm:$0xff] }
  0xa1   : > { %1891 = vmatmul.mubr.msk.f32.gmra.mxu0 %vm354_vm9, %v2185_v37  ;;  %1356 = vmatprep.subr.mxu0 %v2186_v52  ;;  %vm1145_vm9 = vcmask 162816  }
  0xa2   : > { %1893 = vmatprep.mubr.msk.f32.mxu0 %vm355_vm10, %v2185_v37  ;;  %v338_v48 = vpop.permute.xlu1 %337  ;;  %1357 = vmatpush1.msra.mxu0 %v1271_v61  ;;  %vm1162_vm10 = vcmask 326656  }
  0xa3   : > { %v335_v49 = vpop.permute.xlu0 %334  ;;  %vm358_vm13 = vcmp.eq.s32.totalorder %v338_v48, %v296_v34  ;;  %1358 = vmatprep.subr.mxu0 %v2186_v52 }
  0xa4   : > { %vm357_vm12 = vcmp.eq.s32.totalorder %v335_v49, %v296_v34  ;;  %1359 = vmatpush1.msra.mxu0 %v1270_v62 }
  0xa5   : > { %1894 = vmatmul.mubr.msk.f32.gmra.mxu0 %vm356_vm11, %v2185_v37  ;;  %1360 = vmatprep.subr.mxu0 %v2186_v52  ;;  %vm1179_vm11 = vcmask 490496  }
  0xa6   : > { %1896 = vmatprep.mubr.msk.f32.mxu0 %vm357_vm12, %v2185_v37  ;;  %v344_v51 = vpop.permute.xlu1 %343  ;;  %1361 = vmatpush1.msra.mxu0 %v1269_v63  ;;  %vm1196_vm12 = vcmask 654336  }
  0xa7   : > { %v341_v50 = vpop.permute.xlu0 %340  ;;  %vm360_vm15 = vcmp.eq.s32.totalorder %v344_v51, %v296_v34  ;;  %1362 = vmatprep.subr.mxu0 %v2186_v52  ;;  %v1281_v51 = vld [vmem:[%s3095_s2 + $0x88] sm:$0xff] }
  0xa8   : > { %vm359_vm14 = vcmp.eq.s32.totalorder %v341_v50, %v296_v34  ;;  %1363 = vmatpush1.msra.mxu0 %v1268_v1 }
  0xa9   : > { %1897 = vmatmul.mubr.msk.f32.gmra.mxu0 %vm358_vm13, %v2185_v37  ;;  %1364 = vmatprep.subr.mxu0 %v2186_v52  ;;  %vm1213_vm13 = vcmask 818176  }
  0xaa   : > { %1899 = vmatprep.mubr.msk.f32.mxu0 %vm359_vm14, %v2185_v37  ;;  %1365 = vmatpush1.msra.mxu0 %v1267_v3  ;;  %vm1230_vm14 = vcmask 982016  }
  0xab   : > { %1366 = vmatprep.subr.mxu0 %v2186_v52 }
  0xac   : > { %1367 = vmatpush1.msra.mxu0 %v1266_v14 }
  0xad   : > { %1900 = vmatmul.mubr.msk.f32.gmra.mxu0 %vm360_vm15, %v2185_v37  ;;  %1368 = vmatprep.subr.mxu0 %v2186_v52  ;;  %v1283_v37 = vld [vmem:[%s3095_s2 + $0x98] sm:$0xff]  ;;  %vm2194_vm15 = vmmov 0  }
  0xae   : > { %1947 = vmatpush2.msra.mxu1 %v1283_v37  ;;  %1369 = vmatpush1.msra.mxu0 %v1265_v16 }
  0xaf   : > { %1928 = vmatprep.subr.mxu1 %v2186_v52  ;;  %1370 = vmatprep.subr.mxu0 %v2186_v52 }
  0xb0   : > { %1948 = vmatpush2.msra.mxu1 %v1282_v45  ;;  %1371 = vmatpush1.msra.mxu0 %v1264_v28 }
  0xb1   : > { %1929 = vmatprep.subr.mxu1 %v2186_v52  ;;  %1396 = vmatprep.subr.mxu0 %v2186_v52 }
  0xb2   : > { %1949 = vmatpush2.msra.mxu1 %v1281_v51  ;;  %1397 = vmatpush2.msra.mxu0 %v1283_v37 }
  0xb3   : > { %1930 = vmatprep.subr.mxu1 %v2186_v52  ;;  %1398 = vmatprep.subr.mxu0 %v2186_v52 }
  0xb4   : > { %1950 = vmatpush2.msra.mxu1 %v1280_v60  ;;  %1399 = vmatpush2.msra.mxu0 %v1282_v45 }
  0xb5   : > { %1400 = vmatprep.subr.mxu0 %v2186_v52 }
  0xb6   : > { %1401 = vmatpush2.msra.mxu0 %v1281_v51 }
  0xb7   : > { %1402 = vmatprep.subr.mxu0 %v2186_v52 }
  0xb8   : > { %1403 = vmatpush2.msra.mxu0 %v1280_v60 }
  0xb9   : > { %1902 = vmatprep.subr.mxu0 %v2186_v52 }
 0x151   : > { %v2370_v0 = vpop.f32.mrf.mxu0 }
 0x152   : > { %v1065_v5 = vrot.slane %v2370_v0, 7  ;;  %v983_v7 = vrot.slane %v2370_v0, 6 }
 0x153   : > { %v2377_v2 = vpop.f32.mrf.mxu0 }
 0x154   : > { %v1064_v4 = vrot.slane %v2377_v2, 7  ;;  %v982_v6 = vrot.slane %v2377_v2, 6 }
 0x155   : > { %v2388_v8 = vpop.f32.mrf.mxu0 }
 0x156   : > { %v1066_v9 = vsel %vm1063_vm0, %v1064_v4, %v1065_v5  ;;  %v984_v10 = vsel %vm981_vm1, %v982_v6, %v983_v7  ;;  %v987_v20 = vrot.slane %v2388_v8, 6  ;;  %v1069_v21 = vrot.slane %v2388_v8, 7 }
 0x157   : > { %1097 = vrot.lane.b32.xlu1 %v1066_v9, %s2187_s26  ;;  %1015 = vrot.lane.b32.xlu0 %v984_v10, %s2188_s27  ;;  %v2396_v11 = vpop.f32.mrf.mxu0  ;;  %v659_v22 = vrot.slane %v2388_v8, 2  ;;  %v577_v23 = vrot.slane %v2388_v8, 1  ;;  %v823_v38 = vrot.slane %v2388_v8, 4  ;;  %v741_v40 = vrot.slane %v2388_v8, 3 }
 0x158   : > { %v1067_v12 = vrot.slane %v2396_v11, 7  ;;  %v985_v13 = vrot.slane %v2396_v11, 6  ;;  %v905_v53 = vrot.slane %v2388_v8, 5 }
 0x159   : > { %v2403_v15 = vpop.f32.mrf.mxu0 }
 0x15a   : > { %v1068_v17 = vsel %vm1063_vm0, %v1065_v5, %v1067_v12  ;;  %v986_v18 = vsel %vm981_vm1, %v983_v7, %v985_v13  ;;  %v663_v25 = vrot.slane %v2403_v15, 2  ;;  %v581_v27 = vrot.slane %v2403_v15, 1 }
 0x15b   : > { %1099 = vrot.lane.b32.xlu0 %v1068_v17, %s2187_s26  ;;  %1017 = vrot.lane.b32.xlu1 %v986_v18, %s2188_s27  ;;  %v2413_v19 = vpop.f32.mrf.mxu0  ;;  %v988_v29 = vsel %vm981_vm1, %v985_v13, %v987_v20  ;;  %v1070_v30 = vsel %vm1063_vm0, %v1067_v12, %v1069_v21  ;;  %v827_v39 = vrot.slane %v2403_v15, 4  ;;  %v745_v41 = vrot.slane %v2403_v15, 3 }
 0x15c   : > { %v661_v24 = vrot.slane %v2413_v19, 2  ;;  %v579_v26 = vrot.slane %v2413_v19, 1  ;;  %v825_v31 = vrot.slane %v2413_v19, 4  ;;  %v743_v32 = vrot.slane %v2413_v19, 3 }
 0x15d   : > { %v907_v49 = vrot.slane %v2413_v19, 5  ;;  %v2475_v50 = vpop.f32.mrf.mxu0  ;;  %v909_v54 = vrot.slane %v2403_v15, 5  ;;  %v989_v57 = vrot.slane %v2413_v19, 6  ;;  %v1071_v63 = vrot.slane %v2413_v19, 7 }
 0x15e   : > { %v662_v33 = vsel %vm653_vm2, %v659_v22, %v661_v24  ;;  %v664_v34 = vsel %vm653_vm2, %v661_v24, %v663_v25  ;;  %v580_v35 = vsel %vm571_vm3, %v577_v23, %v579_v26  ;;  %v582_v36 = vsel %vm571_vm3, %v579_v26, %v581_v27 }
 0x15f   : > { %1019 = vrot.lane.b32.xlu0 %v988_v29, %s2188_s27  ;;  %1101 = vrot.lane.b32.xlu1 %v1070_v30, %s2187_s26  ;;  %v1977_v42 = vpack.i.bf16 %v664_v34, %v662_v33  ;;  %v1972_v43 = vpack.i.bf16 %v582_v36, %v580_v35  ;;  %v826_v44 = vsel %vm817_vm4, %v823_v38, %v825_v31  ;;  %v2496_v61 = vpop.f32.mrf.mxu0  ;;  %v1073_v4 = vrot.slane %v2403_v15, 7 }
 0x160   : > { %v828_v46 = vsel %vm817_vm4, %v825_v31, %v827_v39  ;;  %v744_v47 = vsel %vm735_vm5, %v741_v40, %v743_v32  ;;  %v746_v48 = vsel %vm735_vm5, %v743_v32, %v745_v41  ;;  %v908_v58 = vsel %vm899_vm6, %v905_v53, %v907_v49 }
 0x161   : > { %v1987_v55 = vpack.i.bf16 %v828_v46, %v826_v44  ;;  %v1982_v56 = vpack.i.bf16 %v746_v48, %v744_v47  ;;  %v910_v59 = vsel %vm899_vm6, %v907_v49, %v909_v54  ;;  %v990_v1 = vsel %vm981_vm1, %v987_v20, %v989_v57  ;;  %v2547_v33 = vpop.f32.mrf.mxu0 }
 0x162   : > { %v1992_v62 = vpack.i.bf16 %v910_v59, %v908_v58  ;;  %v583_v3 = vrot.slane %v2496_v61, 1  ;;  %v585_v5 = vrot.slane %v2475_v50, 1  ;;  %v1074_v6 = vsel %vm1063_vm0, %v1071_v63, %v1073_v4 }
 0x163   : > { %1978 = vrot.lane.b32.xlu1 %v1977_v42, %s2189_s16  ;;  %1973 = vrot.lane.b32.xlu0 %v1972_v43, %s2190_s17  ;;  %v665_v7 = vrot.slane %v2496_v61, 2  ;;  %v1072_v9 = vsel %vm1063_vm0, %v1069_v21, %v1071_v63  ;;  %v747_v13 = vrot.slane %v2496_v61, 3  ;;  %v991_v14 = vrot.slane %v2403_v15, 6  ;;  %v2559_v43 = vpop.f32.mrf.mxu0 }
 0x164   : > { %v584_v10 = vsel %vm571_vm3, %v581_v27, %v583_v3  ;;  %v586_v12 = vsel %vm571_vm3, %v583_v3, %v585_v5  ;;  %v667_v16 = vrot.slane %v2475_v50, 2  ;;  %v749_v17 = vrot.slane %v2475_v50, 3 }
 0x165   : > { %v992_v18 = vsel %vm981_vm1, %v989_v57, %v991_v14  ;;  %v1997_v20 = vpack.i.bf16 %v586_v12, %v584_v10  ;;  %v666_v21 = vsel %vm653_vm2, %v663_v25, %v665_v7  ;;  %v829_v24 = vrot.slane %v2496_v61, 4 }
 0x166   : > { %v668_v26 = vsel %vm653_vm2, %v665_v7, %v667_v16  ;;  %v748_v27 = vsel %vm735_vm5, %v745_v41, %v747_v13  ;;  %v750_v28 = vsel %vm735_vm5, %v747_v13, %v749_v17  ;;  %v911_v29 = vrot.slane %v2496_v61, 5 }
 0x167   : > { %1988 = vrot.lane.b32.xlu1 %v1987_v55, %s2191_s21  ;;  %1983 = vrot.lane.b32.xlu0 %v1982_v56, %s2192_s22  ;;  %v831_v25 = vrot.slane %v2475_v50, 4  ;;  %v913_v30 = vrot.slane %v2475_v50, 5  ;;  %v2002_v31 = vpack.i.bf16 %v668_v26, %v666_v21  ;;  %v2007_v32 = vpack.i.bf16 %v750_v28, %v748_v27 }
 0x168   : > { %v830_v34 = vsel %vm817_vm4, %v827_v39, %v829_v24  ;;  %v912_v36 = vsel %vm899_vm6, %v909_v54, %v911_v29  ;;  %v993_v44 = vrot.slane %v2496_v61, 6  ;;  %v1075_v39 = vrot.slane %v2496_v61, 7 }
 0x169   : > { %v832_v35 = vsel %vm817_vm4, %v829_v24, %v831_v25  ;;  %v914_v37 = vsel %vm899_vm6, %v911_v29, %v913_v30  ;;  %v669_v45 = vrot.slane %v2559_v43, 2  ;;  %v587_v48 = vrot.slane %v2559_v43, 1 }
 0x16a   : > { %v2012_v41 = vpack.i.bf16 %v832_v35, %v830_v34  ;;  %v2017_v42 = vpack.i.bf16 %v914_v37, %v912_v36  ;;  %v994_v46 = vsel %vm981_vm1, %v991_v14, %v993_v44  ;;  %v1076_v47 = vsel %vm1063_vm0, %v1073_v4, %v1075_v39  ;;  %v2594_v14 = vpop.f32.mrf.mxu0 }
 0x16b   : > { %1021 = vrot.lane.b32.xlu1 %v990_v1, %s2188_s27  ;;  %1993 = vrot.lane.b32.xlu0 %v1992_v62, %s2193_s23  ;;  %v1077_v49 = vrot.slane %v2475_v50, 7  ;;  %v995_v51 = vrot.slane %v2475_v50, 6  ;;  %v671_v54 = vrot.slane %v2547_v33, 2  ;;  %v589_v55 = vrot.slane %v2547_v33, 1 }
 0x16c   : > { %v670_v58 = vsel %vm653_vm2, %v667_v16, %v669_v45  ;;  %v833_v59 = vrot.slane %v2559_v43, 4  ;;  %v588_v62 = vsel %vm571_vm3, %v585_v5, %v587_v48  ;;  %v751_v1 = vrot.slane %v2559_v43, 3  ;;  %v2602_v26 = vpop.f32.mrf.mxu0 }
 0x16d   : > { %v1078_v56 = vsel %vm1063_vm0, %v1075_v39, %v1077_v49  ;;  %v996_v57 = vsel %vm981_vm1, %v993_v44, %v995_v51  ;;  %v672_v60 = vsel %vm653_vm2, %v669_v45, %v671_v54  ;;  %v590_v63 = vsel %vm571_vm3, %v587_v48, %v589_v55 }
 0x16e   : > { %v835_v3 = vrot.slane %v2547_v33, 4  ;;  %v753_v4 = vrot.slane %v2547_v33, 3  ;;  %v2022_v7 = vpack.i.bf16 %v590_v63, %v588_v62  ;;  %v752_v5 = vsel %vm735_vm5, %v749_v17, %v751_v1 }
 0x16f   : > { %1105 = vrot.lane.b32.xlu1 %v1074_v6, %s2187_s26  ;;  %1103 = vrot.lane.b32.xlu0 %v1072_v9, %s2187_s26  ;;  %v2027_v6 = vpack.i.bf16 %v672_v60, %v670_v58  ;;  %v834_v9 = vsel %vm817_vm4, %v831_v25, %v833_v59  ;;  %v915_v13 = vrot.slane %v2559_v43, 5  ;;  %v917_v16 = vrot.slane %v2547_v33, 5 }
 0x170   : > { %v836_v10 = vsel %vm817_vm4, %v833_v59, %v835_v3  ;;  %v754_v12 = vsel %vm735_vm5, %v751_v1, %v753_v4  ;;  %v997_v21 = vrot.slane %v2559_v43, 6  ;;  %v1079_v28 = vrot.slane %v2559_v43, 7 }
 0x171   : > { %v916_v24 = vsel %vm899_vm6, %v913_v30, %v915_v13  ;;  %v918_v17 = vsel %vm899_vm6, %v915_v13, %v917_v16  ;;  %v591_v25 = vrot.slane %v2602_v26, 1  ;;  %v1081_v30 = vrot.slane %v2547_v33, 7 }
 0x172   : > { %v2042_v27 = vpack.i.bf16 %v918_v17, %v916_v24  ;;  %v998_v29 = vsel %vm981_vm1, %v995_v51, %v997_v21  ;;  %v673_v34 = vrot.slane %v2602_v26, 2  ;;  %v1080_v35 = vsel %vm1063_vm0, %v1077_v49, %v1079_v28 }
 0x173   : > { %1023 = vrot.lane.b32.xlu0 %v992_v18, %s2188_s27  ;;  %1998 = vrot.lane.b32.xlu1 %v1997_v20, %s2190_s17  ;;  %v2037_v18 = vpack.i.bf16 %v836_v10, %v834_v9  ;;  %v2032_v20 = vpack.i.bf16 %v754_v12, %v752_v5  ;;  %v592_v36 = vsel %vm571_vm3, %v589_v55, %v591_v25  ;;  %v675_v44 = vrot.slane %v2594_v14, 2 }
 0x174   : > { %v757_v39 = vrot.slane %v2594_v14, 3  ;;  %v837_v48 = vrot.slane %v2602_v26, 4  ;;  %v921_v58 = vrot.slane %v2594_v14, 5  ;;  %v1001_v9 = vrot.slane %v2602_v26, 6 }
 0x175   : > { %v676_v49 = vsel %vm653_vm2, %v673_v34, %v675_v44  ;;  %v1083_v10 = vrot.slane %v2602_v26, 7  ;;  %v572_v24 = vrot.slane %v2377_v2, 1 }
 0x176   : > { %v838_v60 = vsel %vm817_vm4, %v835_v3, %v837_v48 }
 0x177   : > { %2003 = vrot.lane.b32.xlu0 %v2002_v31, %s2189_s16  ;;  %2008 = vrot.lane.b32.xlu1 %v2007_v32, %s2192_s22  ;;  %v593_v31 = vrot.slane %v2594_v14, 1  ;;  %v1082_v32 = vsel %vm1063_vm0, %v1079_v28, %v1081_v30  ;;  %v1084_v12 = vsel %vm1063_vm0, %v1081_v30, %v1083_v10  ;;  %v655_v28 = vrot.slane %v2370_v0, 2 }
 0x179   : > { %v594_v37 = vsel %vm571_vm3, %v591_v25, %v593_v31 }
 0x17b   : > { %2013 = vrot.lane.b32.xlu0 %v2012_v41, %s2191_s21  ;;  %2018 = vrot.lane.b32.xlu1 %v2017_v42, %s2193_s23  ;;  %v755_v41 = vrot.slane %v2602_v26, 3  ;;  %v999_v42 = vrot.slane %v2547_v33, 6 }
 0x17d   : > { %v1000_v45 = vsel %vm981_vm1, %v997_v21, %v999_v42  ;;  %v756_v51 = vsel %vm735_vm5, %v753_v4, %v755_v41  ;;  %v758_v55 = vsel %vm735_vm5, %v755_v41, %v757_v39  ;;  %v2639_v4 = vpop.f32.mrf.mxu0  ;;  %v1002_v3 = vsel %vm981_vm1, %v999_v42, %v1001_v9 }
 0x17e   : > { %v654_v21 = vrot.slane %v2377_v2, 2  ;;  %v736_v41 = vrot.slane %v2377_v2, 3 }
 0x17f   : > { %1025 = vrot.lane.b32.xlu0 %v994_v46, %s2188_s27  ;;  %1107 = vrot.lane.b32.xlu1 %v1076_v47, %s2187_s26  ;;  %v2047_v46 = vpack.i.bf16 %v594_v37, %v592_v36  ;;  %v674_v47 = vsel %vm653_vm2, %v671_v54, %v673_v34  ;;  %v2057_v54 = vpack.i.bf16 %v758_v55, %v756_v51  ;;  %v2645_v5 = vpop.f32.mrf.mxu0  ;;  %v818_v37 = vrot.slane %v2377_v2, 4 }
 0x180   : > { %v2052_v59 = vpack.i.bf16 %v676_v49, %v674_v47  ;;  %v677_v13 = vrot.slane %v2645_v5, 2  ;;  %v759_v34 = vrot.slane %v2645_v5, 3  ;;  %v900_v49 = vrot.slane %v2377_v2, 5 }
 0x182   : > { %v678_v25 = vsel %vm653_vm2, %v675_v44, %v677_v13  ;;  %v760_v47 = vsel %vm735_vm5, %v757_v39, %v759_v34  ;;  %v901_v39 = vrot.slane %v2370_v0, 5 }
 0x183   : > { %1109 = vrot.lane.b32.xlu0 %v1078_v56, %s2187_s26  ;;  %1027 = vrot.lane.b32.xlu1 %v996_v57, %s2188_s27  ;;  %v919_v56 = vrot.slane %v2602_v26, 5  ;;  %v839_v57 = vrot.slane %v2594_v14, 4 }
 0x185   : > { %v840_v62 = vsel %vm817_vm4, %v837_v48, %v839_v57  ;;  %v920_v63 = vsel %vm899_vm6, %v917_v16, %v919_v56  ;;  %v922_v1 = vsel %vm899_vm6, %v919_v56, %v921_v58  ;;  %v595_v16 = vrot.slane %v2645_v5, 1 }
 0x186   : > { %v923_v48 = vrot.slane %v2645_v5, 5  ;;  %v575_v56 = vrot.slane %v2396_v11, 1 }
 0x187   : > { %2028 = vrot.lane.b32.xlu1 %v2027_v6, %s2189_s16  ;;  %2023 = vrot.lane.b32.xlu0 %v2022_v7, %s2190_s17  ;;  %v2062_v6 = vpack.i.bf16 %v840_v62, %v838_v60  ;;  %v2067_v7 = vpack.i.bf16 %v922_v1, %v920_v63  ;;  %v596_v30 = vsel %vm571_vm3, %v593_v31, %v595_v16  ;;  %v819_v31 = vrot.slane %v2370_v0, 4 }
 0x188   : > { %v924_v60 = vsel %vm899_vm6, %v921_v58, %v923_v48  ;;  %v902_v63 = vsel %vm899_vm6, %v900_v49, %v901_v39  ;;  %v739_v58 = vrot.slane %v2396_v11, 3 }
 0x189   : > { %v820_v51 = vsel %vm817_vm4, %v818_v37, %v819_v31 }
 0x18b   : > { %2038 = vrot.lane.b32.xlu1 %v2037_v18, %s2191_s21  ;;  %2033 = vrot.lane.b32.xlu0 %v2032_v20, %s2192_s22  ;;  %v1085_v18 = vrot.slane %v2594_v14, 7  ;;  %v1003_v20 = vrot.slane %v2594_v14, 6 }
 0x18d   : > { %v1086_v17 = vsel %vm1063_vm0, %v1083_v10, %v1085_v18  ;;  %v1005_v10 = vrot.slane %v2645_v5, 6 }
 0x18f   : > { %1029 = vrot.lane.b32.xlu1 %v998_v29, %s2188_s27  ;;  %2043 = vrot.lane.b32.xlu0 %v2042_v27, %s2193_s23  ;;  %v1004_v27 = vsel %vm981_vm1, %v1001_v9, %v1003_v20  ;;  %v573_v29 = vrot.slane %v2370_v0, 1  ;;  %v1087_v9 = vrot.slane %v2645_v5, 7 }
 0x191   : > { %v574_v36 = vsel %vm571_vm3, %v572_v24, %v573_v29  ;;  %v576_v1 = vsel %vm571_vm3, %v573_v29, %v575_v56  ;;  %v1088_v24 = vsel %vm1063_vm0, %v1085_v18, %v1087_v9  ;;  %v843_v18 = vrot.slane %v2639_v4, 4 }
 0x192   : > { %v2072_v44 = vpack.i.bf16 %v574_v36, %v596_v30  ;;  %v821_v36 = vrot.slane %v2396_v11, 4 }
 0x193   : > { %1113 = vrot.lane.b32.xlu1 %v1082_v32, %s2187_s26  ;;  %1111 = vrot.lane.b32.xlu0 %v1080_v35, %s2187_s26  ;;  %v841_v32 = vrot.slane %v2645_v5, 4  ;;  %v656_v35 = vsel %vm653_vm2, %v654_v21, %v655_v28  ;;  %v679_v21 = vrot.slane %v2639_v4, 2 }
 0x194   : > { %v2077_v42 = vpack.i.bf16 %v656_v35, %v678_v25 }
 0x195   : > { %v680_v29 = vsel %vm653_vm2, %v677_v13, %v679_v21 }
 0x197   : > { %1031 = vrot.lane.b32.xlu0 %v1000_v45, %s2188_s27  ;;  %2048 = vrot.lane.b32.xlu1 %v2047_v46, %s2190_s17  ;;  %v842_v45 = vsel %vm817_vm4, %v839_v57, %v841_v32  ;;  %v737_v46 = vrot.slane %v2370_v0, 3  ;;  %v597_v57 = vrot.slane %v2639_v4, 1 }
 0x199   : > { %v738_v55 = vsel %vm735_vm5, %v736_v41, %v737_v46  ;;  %v598_v62 = vsel %vm571_vm3, %v595_v16, %v597_v57  ;;  %v657_v16 = vrot.slane %v2396_v11, 2  ;;  %v740_v30 = vsel %vm735_vm5, %v737_v46, %v739_v58 }
 0x19a   : > { %v1007_v41 = vrot.slane %v2639_v4, 6 }
 0x19b   : > { %2053 = vrot.lane.b32.xlu0 %v2052_v59, %s2189_s16  ;;  %2058 = vrot.lane.b32.xlu1 %v2057_v54, %s2192_s22  ;;  %v2087_v59 = vpack.i.bf16 %v820_v51, %v842_v45  ;;  %v2082_v54 = vpack.i.bf16 %v738_v55, %v760_v47  ;;  %v658_v35 = vsel %vm653_vm2, %v655_v28, %v657_v16  ;;  %v903_v28 = vrot.slane %v2396_v11, 5 }
 0x19c   : > { %v1008_v46 = vsel %vm981_vm1, %v1005_v10, %v1007_v41 }
 0x19d   : > { %v904_v51 = vsel %vm899_vm6, %v901_v39, %v903_v28  ;;  %v660_v39 = vsel %vm653_vm2, %v657_v16, %v659_v22  ;;  %v742_v22 = vsel %vm735_vm5, %v739_v58, %v741_v40  ;;  %v906_v58 = vsel %vm899_vm6, %v903_v28, %v905_v53 }
 0x19f   : > { %2063 = vrot.lane.b32.xlu0 %v2062_v6, %s2191_s21  ;;  %2068 = vrot.lane.b32.xlu1 %v2067_v7, %s2193_s23  ;;  %v2097_v6 = vpack.i.bf16 %v902_v63, %v924_v60  ;;  %v2092_v7 = vpack.i.bf16 %v576_v1, %v598_v62  ;;  %v1089_v60 = vrot.slane %v2639_v4, 7 }
 0x1a3   : > { %1033 = vrot.lane.b32.xlu0 %v1002_v3, %s2188_s27  ;;  %1115 = vrot.lane.b32.xlu1 %v1084_v12, %s2187_s26  ;;  %v2694_v3 = vpop.f32.mrf.mxu0  ;;  %v761_v12 = vrot.slane %v2639_v4, 3 }
 0x1a4   : > { %v765_v53 = vrot.slane %v2694_v3, 3 }
 0x1a5   : > { %v2706_v25 = vpop.f32.mrf.mxu0 }
 0x1a6   : > { %v599_v13 = vrot.slane %v2706_v25, 1  ;;  %v681_v49 = vrot.slane %v2706_v25, 2  ;;  %v927_v1 = vrot.slane %v2706_v25, 5 }
 0x1a7   : > { %1117 = vrot.lane.b32.xlu0 %v1086_v17, %s2187_s26  ;;  %1035 = vrot.lane.b32.xlu1 %v1004_v27, %s2188_s27  ;;  %v1006_v17 = vsel %vm981_vm1, %v1003_v20, %v1005_v10  ;;  %v762_v27 = vsel %vm735_vm5, %v759_v34, %v761_v12  ;;  %v2102_v20 = vpack.i.bf16 %v658_v35, %v680_v29 }
 0x1a8   : > { %v2107_v37 = vpack.i.bf16 %v740_v30, %v762_v27  ;;  %v844_v34 = vsel %vm817_vm4, %v841_v32, %v843_v18  ;;  %v600_v32 = vsel %vm571_vm3, %v597_v57, %v599_v13  ;;  %v845_v57 = vrot.slane %v2706_v25, 4 }
 0x1aa   : > { %v846_v63 = vsel %vm817_vm4, %v843_v18, %v845_v57  ;;  %v1091_v18 = vrot.slane %v2706_v25, 7 }
 0x1ab   : > { %2078 = vrot.lane.b32.xlu1 %v2077_v42, %s2189_s16  ;;  %2073 = vrot.lane.b32.xlu0 %v2072_v44, %s2190_s17  ;;  %v822_v42 = vsel %vm817_vm4, %v819_v31, %v821_v36  ;;  %v925_v44 = vrot.slane %v2639_v4, 5  ;;  %v578_v31 = vsel %vm571_vm3, %v575_v56, %v577_v23  ;;  %v1090_v23 = vsel %vm1063_vm0, %v1087_v9, %v1089_v60 }
 0x1ac   : > { %v2112_v45 = vpack.i.bf16 %v822_v42, %v844_v34  ;;  %v603_v9 = vrot.slane %v2186_v52, 1  ;;  %v767_v34 = vrot.slane %v2186_v52, 3 }
 0x1ad   : > { %v926_v47 = vsel %vm899_vm6, %v923_v48, %v925_v44  ;;  %v763_v48 = vrot.slane %v2706_v25, 3  ;;  %v928_v40 = vsel %vm899_vm6, %v925_v44, %v927_v1  ;;  %v1092_v44 = vsel %vm1063_vm0, %v1089_v60, %v1091_v18 }
 0x1ae   : > { %v2117_v55 = vpack.i.bf16 %v904_v51, %v926_v47  ;;  %v2147_v35 = vpack.i.bf16 %v906_v58, %v928_v40  ;;  %v849_v47 = vrot.slane %v2186_v52, 4 }
 0x1af   : > { %2088 = vrot.lane.b32.xlu1 %v2087_v59, %s2191_s21  ;;  %2083 = vrot.lane.b32.xlu0 %v2082_v54, %s2192_s22  ;;  %v2122_v59 = vpack.i.bf16 %v578_v31, %v600_v32  ;;  %v682_v54 = vsel %vm653_vm2, %v679_v21, %v681_v49  ;;  %v764_v56 = vsel %vm735_vm5, %v761_v12, %v763_v48  ;;  %v931_v32 = vrot.slane %v2186_v52, 5 }
 0x1b0   : > { %v2127_v62 = vpack.i.bf16 %v660_v39, %v682_v54  ;;  %v2132_v16 = vpack.i.bf16 %v742_v22, %v764_v56  ;;  %v768_v31 = vsel %vm735_vm5, %v765_v53, %v767_v34 }
 0x1b3   : > { %2098 = vrot.lane.b32.xlu1 %v2097_v6, %s2193_s23  ;;  %2093 = vrot.lane.b32.xlu0 %v2092_v7, %s2190_s17  ;;  %v824_v6 = vsel %vm817_vm4, %v821_v36, %v823_v38  ;;  %v601_v7 = vrot.slane %v2694_v3, 1  ;;  %v1009_v36 = vrot.slane %v2706_v25, 6 }
 0x1b4   : > { %v2137_v21 = vpack.i.bf16 %v824_v6, %v846_v63 }
 0x1b5   : > { %v604_v38 = vsel %vm571_vm3, %v601_v7, %v603_v9  ;;  %v1010_v28 = vsel %vm981_vm1, %v1007_v41, %v1009_v36  ;;  %v847_v41 = vrot.slane %v2694_v3, 4 }
 0x1b7   : > { %1119 = vrot.lane.b32.xlu1 %v1088_v24, %s2187_s26  ;;  %1037 = vrot.lane.b32.xlu0 %v1006_v17, %s2188_s27  ;;  %v602_v17 = vsel %vm571_vm3, %v599_v13, %v601_v7  ;;  %v848_v39 = vsel %vm817_vm4, %v845_v57, %v847_v41  ;;  %v850_v56 = vsel %vm817_vm4, %v847_v41, %v849_v47 }
 0x1b8   : > { %v2142_v30 = vpack.i.bf16 %v604_v38, %v602_v17  ;;  %v1093_v38 = vrot.slane %v2694_v3, 7 }
 0x1bb   : > { %2108 = vrot.lane.b32.xlu1 %v2107_v37, %s2192_s22  ;;  %2103 = vrot.lane.b32.xlu0 %v2102_v20, %s2189_s16  ;;  %v683_v37 = vrot.slane %v2694_v3, 2  ;;  %v685_v20 = vrot.slane %v2186_v52, 2 }
 0x1bd   : > { %v686_v51 = vsel %vm653_vm2, %v683_v37, %v685_v20 }
 0x1bf   : > { %1039 = vrot.lane.b32.xlu1 %v1008_v46, %s2188_s27  ;;  %2113 = vrot.lane.b32.xlu0 %v2112_v45, %s2191_s21  ;;  %v684_v45 = vsel %vm653_vm2, %v681_v49, %v683_v37  ;;  %v766_v46 = vsel %vm735_vm5, %v763_v48, %v765_v53 }
 0x1c0   : > { %v2152_v54 = vpack.i.bf16 %v686_v51, %v684_v45  ;;  %v2157_v48 = vpack.i.bf16 %v768_v31, %v766_v46 }
 0x1c3   : > { %2118 = vrot.lane.b32.xlu0 %v2117_v55, %s2193_s23  ;;  %2123 = vrot.lane.b32.xlu1 %v2122_v59, %s2190_s17  ;;  %v929_v55 = vrot.slane %v2694_v3, 5 }
 0x1c5   : > { %v932_v63 = vsel %vm899_vm6, %v929_v55, %v931_v32 }
 0x1c7   : > { %1121 = vrot.lane.b32.xlu0 %v1090_v23, %s2187_s26  ;;  %2128 = vrot.lane.b32.xlu1 %v2127_v62, %s2189_s16  ;;  %v930_v62 = vsel %vm899_vm6, %v927_v1, %v929_v55 }
 0x1c8   : > { %v2167_v57 = vpack.i.bf16 %v932_v63, %v930_v62 }
 0x1c9   : > { %v1098_v10 = vpop.permute.xlu1 %1097  ;;  %v2757_v12 = vpop.permute.xlu0 %1015 }
 0x1ca   : > { %v1248_v24 = vsel %vm1247_vm7, %v2757_v12, %v1098_v10  ;;  %v2162_v10 = vpack.i.bf16 %v850_v56, %v848_v39 }
 0x1cb   : > { %2133 = vrot.lane.b32.xlu0 %v2132_v16, %s2192_s22  ;;  %2138 = vrot.lane.b32.xlu1 %v2137_v21, %s2191_s21  ;;  %v1011_v16 = vrot.slane %v2694_v3, 6  ;;  %v1013_v21 = vrot.slane %v2186_v52, 6 }
 0x1cc   : > { %1789 = vmatprep.mubr.msk.f32.mxu0 %vm1291_vm8, %v1248_v24  ;;  %v1095_v24 = vrot.slane %v2186_v52, 7 }
 0x1cd   : > { %v2770_v27 = vpop.permute.xlu1 %1017  ;;  %v2772_v29 = vpop.permute.xlu0 %1099  ;;  %v1012_v34 = vsel %vm981_vm1, %v1009_v36, %v1011_v16  ;;  %v1014_v36 = vsel %vm981_vm1, %v1011_v16, %v1013_v21 }
 0x1cf   : > { %2143 = vrot.lane.b32.xlu0 %v2142_v30, %s2190_s17  ;;  %2148 = vrot.lane.b32.xlu1 %v2147_v35, %s2193_s23 }
 0x1d1   : > { %v2782_v13 = vpop.permute.xlu1 %1101  ;;  %v2784_v42 = vpop.permute.xlu0 %1019 }
 0x1d3   : > { %1041 = vrot.lane.b32.xlu0 %v1010_v28, %s2188_s27  ;;  %1123 = vrot.lane.b32.xlu1 %v1092_v44, %s2187_s26  ;;  %v1094_v28 = vsel %vm1063_vm0, %v1091_v18, %v1093_v38  ;;  %v1096_v18 = vsel %vm1063_vm0, %v1093_v38, %v1095_v24 }
 0x1d5   : > { %v1979_v59 = vpop.permute.xlu1 %1978  ;;  %v1974_v49 = vpop.permute.xlu0 %1973 }
 0x1d6   : > { %v1975_v60 = vunpack.i.l.bf16 %v1974_v49  ;;  %v1980_v23 = vunpack.i.l.bf16 %v1979_v59  ;;  %v1976_v22 = vunpack.i.h.bf16 %v1974_v49  ;;  %v1981_v17 = vunpack.i.h.bf16 %v1979_v59 }
 0x1d7   : > { %2153 = vrot.lane.b32.xlu0 %v2152_v54, %s2189_s16  ;;  %2158 = vrot.lane.b32.xlu1 %v2157_v48, %s2192_s22 }
 0x1d8   : > { %v1149_v6 = vsel %vm1145_vm9, %v2388_v8, %v1975_v60  ;;  %v1150_v58 = vsel %vm1145_vm9, %v2413_v19, %v1976_v22 }
 0x1d9   : > { %v1989_v7 = vpop.permute.xlu1 %1988  ;;  %v1984_v9 = vpop.permute.xlu0 %1983  ;;  %v1166_v8 = vsel %vm1162_vm10, %v1149_v6, %v1980_v23  ;;  %v1167_v45 = vsel %vm1162_vm10, %v1150_v58, %v1981_v17 }
 0x1da   : > { %v1985_v1 = vunpack.i.l.bf16 %v1984_v9  ;;  %v1990_v40 = vunpack.i.l.bf16 %v1989_v7  ;;  %v1986_v30 = vunpack.i.h.bf16 %v1984_v9  ;;  %v1991_v44 = vunpack.i.h.bf16 %v1989_v7 }
 0x1db   : > { %2163 = vrot.lane.b32.xlu0 %v2162_v10, %s2191_s21  ;;  %2168 = vrot.lane.b32.xlu1 %v2167_v57, %s2193_s23 }
 0x1dc   : > { %v1183_v35 = vsel %vm1179_vm11, %v1166_v8, %v1985_v1  ;;  %v1184_v46 = vsel %vm1179_vm11, %v1167_v45, %v1986_v30 }
 0x1dd   : > { %v1022_v37 = vpop.permute.xlu1 %1021  ;;  %v1994_v20 = vpop.permute.xlu0 %1993  ;;  %v1200_v19 = vsel %vm1196_vm12, %v1183_v35, %v1990_v40  ;;  %v1201_v59 = vsel %vm1196_vm12, %v1184_v46, %v1991_v44 }
 0x1de   : > { %v1995_v53 = vunpack.i.l.bf16 %v1994_v20  ;;  %v1996_v47 = vunpack.i.h.bf16 %v1994_v20 }
 0x1df   : > { %1043 = vrot.lane.b32.xlu0 %v1012_v34, %s2188_s27  ;;  %1125 = vrot.lane.b32.xlu1 %v1094_v28, %s2187_s26 }
 0x1e0   : > { %v1217_v31 = vsel %vm1213_vm13, %v1200_v19, %v1995_v53  ;;  %v1218_v48 = vsel %vm1213_vm13, %v1201_v59, %v1996_v47 }
 0x1e1   : > { %v1106_v32 = vpop.permute.xlu1 %1105  ;;  %v1104_v51 = vpop.permute.xlu0 %1103  ;;  %v1234_v55 = vsel %vm1230_vm14, %v1217_v31, %v1022_v37 }
 0x1e2   : > { %v1251_v41 = vsel %vm1247_vm7, %v1022_v37, %v1104_v51 }
 0x1e3   : > { %1045 = vrot.lane.b32.xlu0 %v1014_v36, %s2188_s27  ;;  %1127 = vrot.lane.b32.xlu1 %v1096_v18, %s2187_s26  ;;  %s1755_s26 = sshll.u32 %s3104_s25, 3 }
 0x1e4   : > { %1792 = vmatprep.mubr.msk.f32.mxu1 %vm1291_vm8, %v1251_v41  ;;  %s278_s29 = scalar_lea.vmem %s3100_s7, %s1755_s26 }
 0x1e5   : > { %1420 = vmatmul.mubr.f32.vlgmr.msra.gmra.mxu1 %v1234_v55  ;;  %v1999_v49 = vpop.permute.xlu1 %1998  ;;  %v1024_v54 = vpop.permute.xlu0 %1023 }
 0x1e6   : > { %v1252_v60 = vsel %vm1247_vm7, %v1024_v54, %v1106_v32  ;;  %v1235_v39 = vsel %vm1230_vm14, %v1218_v48, %v1024_v54  ;;  %v2000_v62 = vunpack.i.l.bf16 %v1999_v49  ;;  %v2001_v23 = vunpack.i.h.bf16 %v1999_v49 }
 0x1e7   : > { %1793 = vmatprep.mubr.msk.f32.mxu1 %vm1291_vm8, %v1252_v60 }
 0x1e8   : > { %v1151_v7 = vsel %vm1145_vm9, %v2403_v15, %v2000_v62  ;;  %v1152_v57 = vsel %vm1145_vm9, %v2496_v61, %v2001_v23 }
 0x1e9   : > { %1425 = vmatmul.mubr.f32.gmra.mxu1 %v1235_v39  ;;  %v2009_v56 = vpop.permute.xlu1 %2008  ;;  %v2004_v63 = vpop.permute.xlu0 %2003 }
 0x1ea   : > { %v2006_v22 = vunpack.i.h.bf16 %v2004_v63  ;;  %v2005_v6 = vunpack.i.l.bf16 %v2004_v63  ;;  %v2010_v9 = vunpack.i.l.bf16 %v2009_v56  ;;  %v2011_v1 = vunpack.i.h.bf16 %v2009_v56 }
 0x1ec   : > { %v1168_v10 = vsel %vm1162_vm10, %v1151_v7, %v2005_v6  ;;  %v1169_v24 = vsel %vm1162_vm10, %v1152_v57, %v2006_v22 }
 0x1ed   : > { %v2019_v16 = vpop.permute.xlu1 %2018  ;;  %v2014_v21 = vpop.permute.xlu0 %2013  ;;  %v1185_v38 = vsel %vm1179_vm11, %v1168_v10, %v2010_v9  ;;  %v1186_v20 = vsel %vm1179_vm11, %v1169_v24, %v2011_v1 }
 0x1ee   : > { %v2020_v17 = vunpack.i.l.bf16 %v2019_v16  ;;  %v2016_v40 = vunpack.i.h.bf16 %v2014_v21  ;;  %v2015_v8 = vunpack.i.l.bf16 %v2014_v21  ;;  %v2021_v30 = vunpack.i.h.bf16 %v2019_v16 }
 0x1f0   : > { %v1202_v58 = vsel %vm1196_vm12, %v1185_v38, %v2015_v8  ;;  %v1203_v34 = vsel %vm1196_vm12, %v1186_v20, %v2016_v40 }
 0x1f1   : > { %v1108_v15 = vpop.permute.xlu1 %1107  ;;  %v1026_v35 = vpop.permute.xlu0 %1025  ;;  %v1219_v37 = vsel %vm1213_vm13, %v1202_v58, %v2020_v17  ;;  %v1220_v45 = vsel %vm1213_vm13, %v1203_v34, %v2021_v30 }
 0x1f2   : > { %v1253_v61 = vsel %vm1247_vm7, %v1026_v35, %v1108_v15  ;;  %v1236_v53 = vsel %vm1230_vm14, %v1219_v37, %v1026_v35 }
 0x1f3   : > { %1794 = vmatprep.mubr.msk.f32.mxu1 %vm1291_vm8, %v1253_v61 }
 0x1f4   : > { %1430 = vmatmul.mubr.f32.gmra.mxu1 %v1236_v53 }
 0x1f5   : > { %v1028_v28 = vpop.permute.xlu1 %1027  ;;  %v1110_v44 = vpop.permute.xlu0 %1109 }
 0x1f6   : > { %v1254_v19 = vsel %vm1247_vm7, %v1028_v28, %v1110_v44  ;;  %v1237_v46 = vsel %vm1230_vm14, %v1220_v45, %v1028_v28 }
 0x1f7   : > { %1795 = vmatprep.mubr.msk.f32.mxu1 %vm1291_vm8, %v1254_v19 }
 0x1f8   : > { %1435 = vmatmul.mubr.f32.gmra.mxu1 %v1237_v46 }
 0x1f9   : > { %v2029_v47 = vpop.permute.xlu1 %2028  ;;  %v2024_v32 = vpop.permute.xlu0 %2023 }
 0x1fa   : > { %v2025_v51 = vunpack.i.l.bf16 %v2024_v32  ;;  %v2030_v31 = vunpack.i.l.bf16 %v2029_v47  ;;  %v2026_v18 = vunpack.i.h.bf16 %v2024_v32  ;;  %v2031_v48 = vunpack.i.h.bf16 %v2029_v47 }
 0x1fc   : > { %v1153_v36 = vsel %vm1145_vm9, %v2475_v50, %v2025_v51  ;;  %v1154_v39 = vsel %vm1145_vm9, %v2559_v43, %v2026_v18 }
 0x1fd   : > { %v2039_v41 = vpop.permute.xlu1 %2038  ;;  %v2034_v55 = vpop.permute.xlu0 %2033  ;;  %v1170_v54 = vsel %vm1162_vm10, %v1153_v36, %v2030_v31  ;;  %v1171_v6 = vsel %vm1162_vm10, %v1154_v39, %v2031_v48 }
 0x1fe   : > { %v2035_v59 = vunpack.i.l.bf16 %v2034_v55  ;;  %v2040_v49 = vunpack.i.l.bf16 %v2039_v41  ;;  %v2036_v62 = vunpack.i.h.bf16 %v2034_v55  ;;  %v2041_v50 = vunpack.i.h.bf16 %v2039_v41 }
 0x200   : > { %v1187_v60 = vsel %vm1179_vm11, %v1170_v54, %v2035_v59  ;;  %v1188_v9 = vsel %vm1179_vm11, %v1171_v6, %v2036_v62 }
 0x201   : > { %v1030_v23 = vpop.permute.xlu1 %1029  ;;  %v2044_v56 = vpop.permute.xlu0 %2043  ;;  %v1204_v22 = vsel %vm1196_vm12, %v1187_v60, %v2040_v49  ;;  %v1205_v21 = vsel %vm1196_vm12, %v1188_v9, %v2041_v50 }
 0x202   : > { %v2045_v63 = vunpack.i.l.bf16 %v2044_v56  ;;  %v2046_v10 = vunpack.i.h.bf16 %v2044_v56 }
 0x204   : > { %v1221_v7 = vsel %vm1213_vm13, %v1204_v22, %v2045_v63  ;;  %v1222_v40 = vsel %vm1213_vm13, %v1205_v21, %v2046_v10 }
 0x205   : > { %v1114_v57 = vpop.permute.xlu1 %1113  ;;  %v1112_v1 = vpop.permute.xlu0 %1111  ;;  %v1238_v43 = vsel %vm1230_vm14, %v1221_v7, %v1030_v23 }
 0x206   : > { %v1255_v16 = vsel %vm1247_vm7, %v1030_v23, %v1112_v1 }
 0x207   : > { %1796 = vmatprep.mubr.msk.f32.mxu1 %vm1291_vm8, %v1255_v16 }
 0x208   : > { %1440 = vmatmul.mubr.f32.gmra.mxu1 %v1238_v43 }
 0x209   : > { %v2049_v24 = vpop.permute.xlu1 %2048  ;;  %v1032_v17 = vpop.permute.xlu0 %1031 }
 0x20a   : > { %v1256_v8 = vsel %vm1247_vm7, %v1032_v17, %v1114_v57  ;;  %v1239_v38 = vsel %vm1230_vm14, %v1222_v40, %v1032_v17  ;;  %v2050_v58 = vunpack.i.l.bf16 %v2049_v24  ;;  %v2051_v30 = vunpack.i.h.bf16 %v2049_v24 }
 0x20b   : > { %1797 = vmatprep.mubr.msk.f32.mxu1 %vm1291_vm8, %v1256_v8 }
 0x20c   : > { %1445 = vmatmul.mubr.f32.gmra.mxu1 %v1239_v38  ;;  %v1155_v61 = vsel %vm1145_vm9, %v2547_v33, %v2050_v58  ;;  %v1156_v28 = vsel %vm1145_vm9, %v2602_v26, %v2051_v30 }
 0x20d   : > { %v2059_v15 = vpop.permute.xlu1 %2058  ;;  %v2054_v35 = vpop.permute.xlu0 %2053 }
 0x20e   : > { %v2056_v37 = vunpack.i.h.bf16 %v2054_v35  ;;  %v2055_v20 = vunpack.i.l.bf16 %v2054_v35  ;;  %v2060_v53 = vunpack.i.l.bf16 %v2059_v15  ;;  %v2061_v44 = vunpack.i.h.bf16 %v2059_v15 }
 0x210   : > { %v1172_v34 = vsel %vm1162_vm10, %v1155_v61, %v2055_v20  ;;  %v1173_v46 = vsel %vm1162_vm10, %v1156_v28, %v2056_v37  ;;  %v1249_v28 = vsel %vm1247_vm7, %v2770_v27, %v2772_v29 }
 0x211   : > { %v2069_v45 = vpop.permute.xlu1 %2068  ;;  %v2064_v19 = vpop.permute.xlu0 %2063  ;;  %v1189_v31 = vsel %vm1179_vm11, %v1172_v34, %v2060_v53  ;;  %v1190_v59 = vsel %vm1179_vm11, %v1173_v46, %v2061_v44 }
 0x212   : > { %v2070_v47 = vunpack.i.l.bf16 %v2069_v45  ;;  %v2066_v32 = vunpack.i.h.bf16 %v2064_v19  ;;  %v2065_v51 = vunpack.i.l.bf16 %v2064_v19  ;;  %v2071_v18 = vunpack.i.h.bf16 %v2069_v45 }
 0x214   : > { %v1206_v36 = vsel %vm1196_vm12, %v1189_v31, %v2065_v51  ;;  %v1207_v54 = vsel %vm1196_vm12, %v1190_v59, %v2066_v32 }
 0x215   : > { %v1116_v33 = vpop.permute.xlu1 %1115  ;;  %v1034_v41 = vpop.permute.xlu0 %1033  ;;  %v1223_v55 = vsel %vm1213_vm13, %v1206_v36, %v2070_v47  ;;  %v1224_v39 = vsel %vm1213_vm13, %v1207_v54, %v2071_v18 }
 0x216   : > { %v1257_v26 = vsel %vm1247_vm7, %v1034_v41, %v1116_v33  ;;  %v1240_v49 = vsel %vm1230_vm14, %v1223_v55, %v1034_v41 }
 0x217   : > { %1798 = vmatprep.mubr.msk.f32.mxu1 %vm1291_vm8, %v1257_v26 }
 0x218   : > { %1450 = vmatmul.mubr.f32.gmra.mxu1 %v1240_v49 }
 0x219   : > { %v1036_v48 = vpop.permute.xlu1 %1035  ;;  %v1118_v60 = vpop.permute.xlu0 %1117 }
 0x21a   : > { %v1258_v62 = vsel %vm1247_vm7, %v1036_v48, %v1118_v60  ;;  %v1241_v23 = vsel %vm1230_vm14, %v1224_v39, %v1036_v48 }
 0x21b   : > { %1799 = vmatprep.mubr.msk.f32.mxu1 %vm1291_vm8, %v1258_v62 }
 0x21c   : > { %1455 = vmatmul.mubr.f32.gmra.mxu1 %v1241_v23 }
 0x21d   : > { %v2079_v56 = vpop.permute.xlu1 %2078  ;;  %v2074_v63 = vpop.permute.xlu0 %2073 }
 0x21e   : > { %v2076_v22 = vunpack.i.h.bf16 %v2074_v63  ;;  %v2075_v50 = vunpack.i.l.bf16 %v2074_v63  ;;  %v2081_v6 = vunpack.i.h.bf16 %v2079_v56  ;;  %v2080_v7 = vunpack.i.l.bf16 %v2079_v56 }
 0x220   : > { %v1146_v9 = vsel %vm1145_vm9, %v2377_v2, %v2076_v22  ;;  %v1157_v10 = vsel %vm1145_vm9, %v2594_v14, %v2075_v50 }
 0x221   : > { %v2089_v57 = vpop.permute.xlu1 %2088  ;;  %v2084_v1 = vpop.permute.xlu0 %2083  ;;  %v1163_v17 = vsel %vm1162_vm10, %v1146_v9, %v2081_v6  ;;  %v1174_v40 = vsel %vm1162_vm10, %v1157_v10, %v2080_v7  ;;  %v1250_v7 = vsel %vm1247_vm7, %v2784_v42, %v2782_v13 }
 0x222   : > { %v2086_v16 = vunpack.i.h.bf16 %v2084_v1  ;;  %v2085_v43 = vunpack.i.l.bf16 %v2084_v1  ;;  %v2091_v21 = vunpack.i.h.bf16 %v2089_v57  ;;  %v2090_v24 = vunpack.i.l.bf16 %v2089_v57 }
 0x224   : > { %v1180_v8 = vsel %vm1179_vm11, %v1163_v17, %v2086_v16  ;;  %v1191_v38 = vsel %vm1179_vm11, %v1174_v40, %v2085_v43 }
 0x225   : > { %v2099_v58 = vpop.permute.xlu1 %2098  ;;  %v2094_v30 = vpop.permute.xlu0 %2093  ;;  %v1197_v14 = vsel %vm1196_vm12, %v1180_v8, %v2091_v21  ;;  %v1208_v35 = vsel %vm1196_vm12, %v1191_v38, %v2090_v24 }
 0x226   : > { %v2101_v2 = vunpack.i.h.bf16 %v2099_v58  ;;  %v2100_v15 = vunpack.i.l.bf16 %v2099_v58  ;;  %v2096_v47 = vunpack.i.h.bf16 %v2094_v30  ;;  %v2095_v32 = vunpack.i.l.bf16 %v2094_v30 }
 0x228   : > { %v1214_v37 = vsel %vm1213_vm13, %v1197_v14, %v2101_v2  ;;  %v1225_v20 = vsel %vm1213_vm13, %v1208_v35, %v2100_v15  ;;  %v1147_v29 = vsel %vm1145_vm9, %v2370_v0, %v2096_v47  ;;  %v1158_v18 = vsel %vm1145_vm9, %v2645_v5, %v2095_v32 }
 0x229   : > { %v1120_v61 = vpop.permute.xlu1 %1119  ;;  %v1038_v53 = vpop.permute.xlu0 %1037  ;;  %v1231_v34 = vsel %vm1230_vm14, %v1214_v37, %v2757_v12 }
 0x22a   : > { %v1259_v44 = vsel %vm1247_vm7, %v1038_v53, %v1120_v61  ;;  %1405 = vmatmul.mubr.f32.vlgmr.msra.gmra.mxu0 %v1231_v34  ;;  %v1242_v45 = vsel %vm1230_vm14, %v1225_v20, %v1038_v53 }
 0x22b   : > { %1790 = vmatprep.mubr.msk.f32.mxu0 %vm1291_vm8, %v1249_v28  ;;  %1800 = vmatprep.mubr.msk.f32.mxu1 %vm1291_vm8, %v1259_v44 }
 0x22c   : > { %1460 = vmatmul.mubr.f32.gmra.mxu1 %v1242_v45 }
 0x22d   : > { %v2109_v19 = vpop.permute.xlu1 %2108  ;;  %v2104_v46 = vpop.permute.xlu0 %2103 }
 0x22e   : > { %v2106_v51 = vunpack.i.h.bf16 %v2104_v46  ;;  %v2105_v12 = vunpack.i.l.bf16 %v2104_v46  ;;  %v2111_v33 = vunpack.i.h.bf16 %v2109_v19  ;;  %v2110_v41 = vunpack.i.l.bf16 %v2109_v19 }
 0x230   : > { %v1164_v55 = vsel %vm1162_vm10, %v1147_v29, %v2106_v51  ;;  %v1175_v59 = vsel %vm1162_vm10, %v1158_v18, %v2105_v12 }
 0x231   : > { %v1040_v31 = vpop.permute.xlu1 %1039  ;;  %v2114_v36 = vpop.permute.xlu0 %2113  ;;  %v1181_v62 = vsel %vm1179_vm11, %v1164_v55, %v2111_v33  ;;  %v1192_v23 = vsel %vm1179_vm11, %v1175_v59, %v2110_v41 }
 0x232   : > { %v2116_v26 = vunpack.i.h.bf16 %v2114_v36  ;;  %v2115_v49 = vunpack.i.l.bf16 %v2114_v36 }
 0x234   : > { %v1198_v0 = vsel %vm1196_vm12, %v1181_v62, %v2116_v26  ;;  %v1209_v5 = vsel %vm1196_vm12, %v1192_v23, %v2115_v49 }
 0x235   : > { %v2124_v54 = vpop.permute.xlu1 %2123  ;;  %v2119_v48 = vpop.permute.xlu0 %2118 }
 0x236   : > { %v2121_v60 = vunpack.i.h.bf16 %v2119_v48  ;;  %v2120_v39 = vunpack.i.l.bf16 %v2119_v48  ;;  %v2126_v9 = vunpack.i.h.bf16 %v2124_v54  ;;  %v2125_v10 = vunpack.i.l.bf16 %v2124_v54 }
 0x238   : > { %v1215_v56 = vsel %vm1213_vm13, %v1198_v0, %v2121_v60  ;;  %v1226_v63 = vsel %vm1213_vm13, %v1209_v5, %v2120_v39  ;;  %v1148_v24 = vsel %vm1145_vm9, %v2396_v11, %v2126_v9  ;;  %v1159_v13 = vsel %vm1145_vm9, %v2639_v4, %v2125_v10 }
 0x239   : > { %v2129_v22 = vpop.permute.xlu1 %2128  ;;  %v1122_v50 = vpop.permute.xlu0 %1121  ;;  %v1232_v6 = vsel %vm1230_vm14, %v1215_v56, %v2770_v27  ;;  %v1243_v43 = vsel %vm1230_vm14, %v1226_v63, %v1040_v31 }
 0x23a   : > { %v1260_v57 = vsel %vm1247_vm7, %v1040_v31, %v1122_v50  ;;  %1410 = vmatmul.mubr.f32.gmra.mxu0 %v1232_v6  ;;  %v2131_v1 = vunpack.i.h.bf16 %v2129_v22  ;;  %v2130_v16 = vunpack.i.l.bf16 %v2129_v22 }
 0x23b   : > { %1791 = vmatprep.mubr.msk.f32.mxu0 %vm1291_vm8, %v1250_v7  ;;  %1801 = vmatprep.mubr.msk.f32.mxu1 %vm1291_vm8, %v1260_v57 }
 0x23c   : > { %1465 = vmatmul.mubr.f32.gmra.mxu1 %v1243_v43  ;;  %v1165_v8 = vsel %vm1162_vm10, %v1148_v24, %v2131_v1  ;;  %v1176_v38 = vsel %vm1162_vm10, %v1159_v13, %v2130_v16  ;;  %v1600_v16 = vld [vmem:[%s3098_s5 + $0x10] sm:$0x1f]  ;;  %v1599_v43 = vld [vmem:[%s3098_s5 + $0x8] sm:$0xff]  ;;  %v1489_v13 = vld [vmem:[%s3097_s4 + $0x20] sm:$0xff] }
 0x23d   : > { %v2139_v21 = vpop.permute.xlu1 %2138  ;;  %v2134_v27 = vpop.permute.xlu0 %2133  ;;  %1903 = vmatpush3.msk.msra.mxu0 %vm735_vm5, %v1600_v16  ;;  %v1496_v16 = vld [vmem:[%s3097_s4 + $0x58] sm:$0xff] }
 0x23e   : > { %v2136_v17 = vunpack.i.h.bf16 %v2134_v27  ;;  %v2135_v40 = vunpack.i.l.bf16 %v2134_v27  ;;  %v2141_v58 = vunpack.i.h.bf16 %v2139_v21  ;;  %v2140_v30 = vunpack.i.l.bf16 %v2139_v21  ;;  %1904 = vmatprep.subr.mxu0 %v2186_v52  ;;  %v1598_v21 = vld [vmem:[%s3098_s5] sm:$0xff] }
 0x23f   : > { %v2986_v27 = vld [vmem:[%s3096_s3] ss:$0 sm:$0xff]  ;;  %1905 = vmatpush3.msra.mxu0 %v1599_v43 }
 0x240   : > { %v1182_v2 = vsel %vm1179_vm11, %v1165_v8, %v2136_v17  ;;  %v1193_v15 = vsel %vm1179_vm11, %v1176_v38, %v2135_v40  ;;  %1906 = vmatprep.subr.mxu0 %v2186_v52  ;;  %v1490_v40 = vld [vmem:[%s3097_s4 + $0x28] sm:$0xff] }
 0x241   : > { %v2149_v14 = vpop.permute.xlu1 %2148  ;;  %v2144_v35 = vpop.permute.xlu0 %2143  ;;  %v1199_v11 = vsel %vm1196_vm12, %v1182_v2, %v2141_v58  ;;  %v1210_v4 = vsel %vm1196_vm12, %v1193_v15, %v2140_v30  ;;  %1907 = vmatpush3.msra.mxu0 %v1598_v21 }
 0x242   : > { %v2151_v37 = vunpack.i.h.bf16 %v2149_v14  ;;  %v2150_v20 = vunpack.i.l.bf16 %v2149_v14  ;;  %v2145_v46 = vunpack.i.l.bf16 %v2144_v35  ;;  %v2146_v47 = vunpack.i.h.bf16 %v2144_v35 }
 0x244   : > { %v1216_v61 = vsel %vm1213_vm13, %v1199_v11, %v2151_v37  ;;  %v1227_v53 = vsel %vm1213_vm13, %v1210_v4, %v2150_v20  ;;  %v1160_v36 = vsel %vm1145_vm9, %v2706_v25, %v2145_v46  ;;  %v1161_v18 = vsel %vm1145_vm9, %v2694_v3, %v2146_v47  ;;  %v1491_v20 = vld [vmem:[%s3097_s4 + $0x30] sm:$0xff]  ;;  %v1492_v4 = vld [vmem:[%s3097_s4 + $0x38] sm:$0xff] }
 0x245   : > { %v1124_v34 = vpop.permute.xlu1 %1123  ;;  %v1042_v28 = vpop.permute.xlu0 %1041  ;;  %v1233_v44 = vsel %vm1230_vm14, %v1216_v61, %v2784_v42 }
 0x246   : > { %v1261_v45 = vsel %vm1247_vm7, %v1042_v28, %v1124_v34  ;;  %1415 = vmatmul.mubr.f32.gmra.mxu0 %v1233_v44  ;;  %v1244_v19 = vsel %vm1230_vm14, %v1227_v53, %v1042_v28 }
 0x247   : > { %1802 = vmatprep.mubr.msk.f32.mxu1 %vm1291_vm8, %v1261_v45  ;;  %1908 = vmatprep.mubr.msk.f32.mxu0 %vm2194_vm15, %v2186_v52 }
 0x248   : > { %1470 = vmatmul.mubr.f32.gmra.mxu1 %v1244_v19 }
 0x249   : > { %v2159_v32 = vpop.permute.xlu1 %2158  ;;  %v2154_v51 = vpop.permute.xlu0 %2153 }
 0x24a   : > { %v2156_v12 = vunpack.i.h.bf16 %v2154_v51  ;;  %v2155_v31 = vunpack.i.l.bf16 %v2154_v51  ;;  %v2160_v29 = vunpack.i.l.bf16 %v2159_v32  ;;  %v2161_v33 = vunpack.i.h.bf16 %v2159_v32 }
 0x24c   : > { %v1177_v42 = vsel %vm1162_vm10, %v1160_v36, %v2155_v31  ;;  %v1178_v59 = vsel %vm1162_vm10, %v1161_v18, %v2156_v12 }
 0x24d   : > { %v2169_v41 = vpop.permute.xlu1 %2168  ;;  %v2164_v55 = vpop.permute.xlu0 %2163  ;;  %v1194_v48 = vsel %vm1179_vm11, %v1177_v42, %v2160_v29  ;;  %v1195_v0 = vsel %vm1179_vm11, %v1178_v59, %v2161_v33  ;;  %v1494_v59 = vld [vmem:[%s3097_s4 + $0x48] sm:$0xff] }
 0x24e   : > { %v2170_v26 = vunpack.i.l.bf16 %v2169_v41  ;;  %v2166_v49 = vunpack.i.h.bf16 %v2164_v55  ;;  %v2165_v54 = vunpack.i.l.bf16 %v2164_v55  ;;  %v2171_v39 = vunpack.i.h.bf16 %v2169_v41  ;;  %v1485_v55 = vld [vmem:[%s3097_s4] sm:$0xff] }
 0x250   : > { %v1211_v60 = vsel %vm1196_vm12, %v1194_v48, %v2165_v54  ;;  %v1212_v56 = vsel %vm1196_vm12, %v1195_v0, %v2166_v49  ;;  %v1486_v54 = vld [vmem:[%s3097_s4 + $0x8] sm:$0xff]  ;;  %v1493_v48 = vld [vmem:[%s3097_s4 + $0x40] sm:$0xff] }
 0x251   : > { %v1126_v25 = vpop.permute.xlu1 %1125  ;;  %v1044_v62 = vpop.permute.xlu0 %1043  ;;  %v1228_v23 = vsel %vm1213_vm13, %v1211_v60, %v2170_v26  ;;  %v1229_v50 = vsel %vm1213_vm13, %v1212_v56, %v2171_v39 }
 0x252   : > { %v1262_v3 = vsel %vm1247_vm7, %v1044_v62, %v1126_v25  ;;  %v1245_v5 = vsel %vm1230_vm14, %v1228_v23, %v1044_v62 }
 0x253   : > { %1803 = vmatprep.mubr.msk.f32.mxu1 %vm1291_vm8, %v1262_v3 }
 0x254   : > { %1475 = vmatmul.mubr.f32.gmra.mxu1 %v1245_v5 }
 0x255   : > { %v1128_v63 = vpop.permute.xlu1 %1127  ;;  %v1046_v22 = vpop.permute.xlu0 %1045 }
 0x256   : > { %v1263_v6 = vsel %vm1247_vm7, %v1046_v22, %v1128_v63  ;;  %v1246_v7 = vsel %vm1230_vm14, %v1229_v50, %v1046_v22  ;;  %vm1517_vm7 = vcmask 171008  }
 0x257   : > { %1804 = vmatprep.mubr.msk.f32.mxu1 %vm1291_vm8, %v1263_v6 }
 0x258   : > { %1480 = vmatmul.mubr.f32.gmra.mxu1 %v1246_v7 }
 0x2a5   : > { %v2969_v9 = vpop.f32.mrf.mxu1 }
 0x2a6   : > { %v1422_v6 = vadd.f32 %v2986_v27, %v2969_v9 }
 0x2a7   : > { %v1423_v10 = vpop.f32.mrf.mxu1 }
 0x2a8   : > { %v1488_v10 = vld [vmem:[%s3097_s4 + $0x18] sm:$0xff] }
 0x2a9   : > { %v1426_v57 = vpop.f32.mrf.mxu1 }
 0x2aa   : > { %v1427_v24 = vadd.f32 %v2986_v27, %v1426_v57 }
 0x2ab   : > { %v1428_v1 = vpop.f32.mrf.mxu1 }
 0x2ac   : > { %v1505_v8 = vadd.f32 %v1489_v13, %v1427_v24  ;;  %v1504_v13 = vadd.f32 %v1488_v10, %v1422_v6 }
 0x2ae   : > { %v1536_v15 = vsel %vm1517_vm7, %v1505_v8, -inf  ;;  %v1487_v8 = vld [vmem:[%s3097_s4 + $0x10] sm:$0xff] }
 0x2b4   : > { %v1431_v17 = vpop.f32.mrf.mxu1 }
 0x2b5   : > { %v1432_v38 = vadd.f32 %v2986_v27, %v1431_v17  ;;  %v1495_v17 = vld [vmem:[%s3097_s4 + $0x50] sm:$0xff] }
 0x2b6   : > { %v1433_v58 = vpop.f32.mrf.mxu1 }
 0x2b7   : > { %v1506_v30 = vadd.f32 %v1490_v40, %v1432_v38 }
 0x2b8   : > { %v1436_v2 = vpop.f32.mrf.mxu1 }
 0x2b9   : > { %v1537_v52 = vsel %vm1517_vm7, %v1506_v30, -inf  ;;  %v1437_v37 = vadd.f32 %v2986_v27, %v1436_v2 }
 0x2ba   : > { %v2999_v14 = vmax.f32 %v1536_v15, %v1537_v52  ;;  %v1438_v35 = vpop.f32.mrf.mxu1 }
 0x2bb   : > { %v1507_v61 = vadd.f32 %v1491_v20, %v1437_v37  ;;  %v1498_v37 = vld [vmem:[%s3097_s4 + $0x68] sm:$0xff] }
 0x2bc   : > { %v1539_v21 = vrot.slane %v2999_v14, 4 }
 0x2bd   : > { %v1545_v45 = vsel %vm1517_vm7, %v1507_v61, -inf }
 0x2be   : > { %v1540_v20 = vmax.f32 %v2999_v14, %v1539_v21 }
 0x2c8   : > { %v1441_v11 = vpop.f32.mrf.mxu1 }
 0x2c9   : > { %v1442_v53 = vadd.f32 %v2986_v27, %v1441_v11 }
 0x2ca   : > { %v1443_v34 = vpop.f32.mrf.mxu1 }
 0x2cb   : > { %v1508_v28 = vadd.f32 %v1492_v4, %v1442_v53  ;;  %v1497_v4 = vld [vmem:[%s3097_s4 + $0x60] sm:$0xff]  ;;  %v1528_v34 = vsel %vm1517_vm7, %v1504_v13, -inf }
 0x2cc   : > { %v1446_v44 = vpop.f32.mrf.mxu1 }
 0x2cd   : > { %v1546_v19 = vsel %vm1517_vm7, %v1508_v28, -inf  ;;  %v1447_v26 = vadd.f32 %v2986_v27, %v1446_v44 }
 0x2ce   : > { %v1547_v46 = vmax.f32 %v1545_v45, %v1546_v19  ;;  %v1448_v47 = vpop.f32.mrf.mxu1 }
 0x2cf   : > { %v1509_v3 = vadd.f32 %v1493_v48, %v1447_v26 }
 0x2d0   : > { %v1548_v9 = vrot.slane %v1547_v46, 4 }
 0x2d1   : > { %v1554_v7 = vsel %vm1517_vm7, %v1509_v3, -inf }
 0x2d2   : > { %v1549_v28 = vmax.f32 %v1547_v46, %v1548_v9 }
 0x2d8   : > { %v1451_v32 = vpop.f32.mrf.mxu1 }
 0x2d9   : > { %v1452_v41 = vadd.f32 %v2986_v27, %v1451_v32 }
 0x2da   : > { %v1453_v51 = vpop.f32.mrf.mxu1 }
 0x2db   : > { %v1510_v25 = vadd.f32 %v1494_v59, %v1452_v41 }
 0x2dc   : > { %v1456_v12 = vpop.f32.mrf.mxu1 }
 0x2dd   : > { %v1555_v22 = vsel %vm1517_vm7, %v1510_v25, -inf  ;;  %v1457_v24 = vadd.f32 %v2986_v27, %v1456_v12 }
 0x2de   : > { %v1458_v31 = vpop.f32.mrf.mxu1  ;;  %v1556_v57 = vmax.f32 %v1554_v7, %v1555_v22 }
 0x2df   : > { %v1511_v11 = vadd.f32 %v1495_v17, %v1457_v24  ;;  %v1541_v31 = vrot.slane %v1540_v20, 2 }
 0x2e0   : > { %v1557_v38 = vrot.slane %v1556_v57, 4 }
 0x2e1   : > { %v1542_v26 = vmax.f32 %v1540_v20, %v1541_v31 }
 0x2e2   : > { %v1558_v45 = vmax.f32 %v1556_v57, %v1557_v38 }
 0x2e4   : > { %v1559_v41 = vrot.slane %v1558_v45, 2 }
 0x2ea   : > { %v1406_v36 = vpop.f32.mrf.mxu0 }
 0x2eb   : > { %v1407_v33 = vadd.f32 %v2986_v27, %v1406_v36  ;;  %v1563_v36 = vsel %vm1517_vm7, %v1511_v11, -inf }
 0x2ec   : > { %v1408_v29 = vpop.f32.mrf.mxu0  ;;  %v1461_v42 = vpop.f32.mrf.mxu1 }
 0x2ed   : > { %v1501_v60 = vadd.f32 %v1485_v55, %v1407_v33  ;;  %v1462_v1 = vadd.f32 %v2986_v27, %v1461_v42  ;;  %v1550_v29 = vrot.slane %v1549_v28, 2 }
 0x2ee   : > { %v1463_v18 = vpop.f32.mrf.mxu1 }
 0x2ef   : > { %v1518_v56 = vsel %vm1517_vm7, %v1501_v60, -inf  ;;  %v1512_v58 = vadd.f32 %v1496_v16, %v1462_v1  ;;  %v1500_v16 = vld [vmem:[%s3097_s4 + $0x78] sm:$0xff] }
 0x2f1   : > { %v1564_v19 = vsel %vm1517_vm7, %v1512_v58, -inf }
 0x2f2   : > { %v1565_v42 = vmax.f32 %v1563_v36, %v1564_v19  ;;  %v1805_v36 = vld [vmem:[%s3099_s6] ss:$0 sm:$0xff] }
 0x2f4   : > { %v1566_v48 = vrot.slane %v1565_v42, 4 }
 0x2fa   : > { %v1411_v49 = vpop.f32.mrf.mxu0 }
 0x2fb   : > { %v1412_v39 = vadd.f32 %v2986_v27, %v1411_v49 }
 0x2fc   : > { %v1413_v62 = vpop.f32.mrf.mxu0  ;;  %v1466_v23 = vpop.f32.mrf.mxu1 }
 0x2fd   : > { %v1502_v0 = vadd.f32 %v1486_v54, %v1412_v39  ;;  %v1467_v15 = vadd.f32 %v2986_v27, %v1466_v23  ;;  %v1551_v54 = vmax.f32 %v1549_v28, %v1550_v29  ;;  %v1560_v39 = vmax.f32 %v1558_v45, %v1559_v41 }
 0x2fe   : > { %v1468_v5 = vpop.f32.mrf.mxu1 }
 0x2ff   : > { %v1519_v63 = vsel %vm1517_vm7, %v1502_v0, -inf  ;;  %v1513_v14 = vadd.f32 %v1497_v4, %v1467_v15  ;;  %v1543_v0 = vrot.slane %v1542_v26, 1  ;;  %v1561_v7 = vrot.slane %v1560_v39, 1 }
 0x300   : > { %v1520_v50 = vmax.f32 %v1518_v56, %v1519_v63  ;;  %v1552_v56 = vrot.slane %v1551_v54, 1  ;;  %v1567_v63 = vmax.f32 %v1565_v42, %v1566_v48 }
 0x301   : > { %v1572_v55 = vsel %vm1517_vm7, %v1513_v14, -inf  ;;  %v1562_v38 = vmax.f32 %v1560_v39, %v1561_v7 }
 0x302   : > { %v1521_v43 = vrot.slane %v1520_v50, 4  ;;  %v1553_v9 = vmax.f32 %v1551_v54, %v1552_v56  ;;  %v1568_v17 = vrot.slane %v1567_v63, 2 }
 0x304   : > { %v1522_v2 = vmax.f32 %v1520_v50, %v1521_v43  ;;  %v1499_v50 = vld [vmem:[%s3097_s4 + $0x70] sm:$0xff]  ;;  %v1544_v43 = vmax.f32 %v1542_v26, %v1543_v0  ;;  %v1569_v20 = vmax.f32 %v1567_v63, %v1568_v17 }
 0x306   : > { %v1416_v40 = vpop.f32.mrf.mxu0  ;;  %v1523_v51 = vrot.slane %v1522_v2, 2 }
 0x307   : > { %v1417_v30 = vadd.f32 %v2986_v27, %v1416_v40 }
 0x308   : > { %v1418_v52 = vpop.f32.mrf.mxu0  ;;  %v1471_v35 = vpop.f32.mrf.mxu1  ;;  %v1524_v46 = vmax.f32 %v1522_v2, %v1523_v51 }
 0x309   : > { %v1503_v61 = vadd.f32 %v1487_v8, %v1417_v30  ;;  %v1472_v53 = vadd.f32 %v2986_v27, %v1471_v35 }
 0x30a   : > { %v1473_v44 = vpop.f32.mrf.mxu1  ;;  %v1525_v25 = vrot.slane %v1524_v46, 1 }
 0x30b   : > { %v1527_v47 = vsel %vm1517_vm7, %v1503_v61, -inf  ;;  %v1514_v32 = vadd.f32 %v1498_v37, %v1472_v53  ;;  %v1570_v61 = vrot.slane %v1569_v20, 1 }
 0x30c   : > { %v1529_v12 = vmax.f32 %v1527_v47, %v1528_v34  ;;  %v1526_v10 = vmax.f32 %v1524_v46, %v1525_v25 }
 0x30d   : > { %v1573_v33 = vsel %vm1517_vm7, %v1514_v32, -inf  ;;  %v1571_v44 = vmax.f32 %v1569_v20, %v1570_v61 }
 0x30e   : > { %v1530_v18 = vrot.slane %v1529_v12, 4  ;;  %v1574_v49 = vmax.f32 %v1572_v55, %v1573_v33 }
 0x310   : > { %v1531_v59 = vmax.f32 %v1529_v12, %v1530_v18  ;;  %v1575_v3 = vrot.slane %v1574_v49, 4 }
 0x312   : > { %v1532_v60 = vrot.slane %v1531_v59, 2  ;;  %v1576_v21 = vmax.f32 %v1574_v49, %v1575_v3 }
 0x314   : > { %v1533_v62 = vmax.f32 %v1531_v59, %v1532_v60  ;;  %v1476_v23 = vpop.f32.mrf.mxu1  ;;  %v1577_v15 = vrot.slane %v1576_v21, 2 }
 0x315   : > { %v1477_v5 = vadd.f32 %v2986_v27, %v1476_v23 }
 0x316   : > { %v1534_v22 = vrot.slane %v1533_v62, 1  ;;  %v1478_v6 = vpop.f32.mrf.mxu1  ;;  %v1578_v4 = vmax.f32 %v1576_v21, %v1577_v15 }
 0x317   : > { %v1515_v24 = vadd.f32 %v1499_v50, %v1477_v5 }
 0x318   : > { %v1535_v57 = vmax.f32 %v1533_v62, %v1534_v22  ;;  %v1481_v1 = vpop.f32.mrf.mxu1  ;;  %v1579_v28 = vrot.slane %v1578_v4, 1 }
 0x319   : > { %v1482_v13 = vadd.f32 %v2986_v27, %v1481_v1  ;;  %v1581_v35 = vsel %vm1517_vm7, %v1515_v24, -inf }
 0x31a   : > { %v1590_v40 = vsel %vm1063_vm0, %v1526_v10, %v1535_v57  ;;  %v1483_v8 = vpop.f32.mrf.mxu1  ;;  %v1580_v32 = vmax.f32 %v1578_v4, %v1579_v28 }
 0x31b   : > { %v1591_v58 = vsel %vm981_vm1, %v1590_v40, %v1544_v43  ;;  %v1516_v30 = vadd.f32 %v1500_v16, %v1482_v13 }
 0x31c   : > { %v1592_v2 = vsel %vm899_vm6, %v1591_v58, %v1553_v9 }
 0x31d   : > { %v1593_v52 = vsel %vm817_vm4, %v1592_v2, %v1562_v38  ;;  %v1582_v37 = vsel %vm1517_vm7, %v1516_v30, -inf }
 0x31e   : > { %v1583_v27 = vmax.f32 %v1581_v35, %v1582_v37  ;;  %v1594_v19 = vsel %vm735_vm5, %v1593_v52, %v1571_v44 }
 0x31f   : > { %v1595_v14 = vsel %vm653_vm2, %v1594_v19, %v1580_v32 }
 0x320   : > { %v1584_v11 = vrot.slane %v1583_v27, 4 }
 0x322   : > { %v1585_v53 = vmax.f32 %v1583_v27, %v1584_v11 }
 0x324   : > { %v1586_v34 = vrot.slane %v1585_v53, 2 }
 0x326   : > { %v1587_v45 = vmax.f32 %v1585_v53, %v1586_v34 }
 0x328   : > { %v1588_v47 = vrot.slane %v1587_v45, 1 }
 0x32a   : > { %v1589_v51 = vmax.f32 %v1587_v45, %v1588_v47 }
 0x32c   : > { %v1596_v12 = vsel %vm571_vm3, %v1595_v14, %v1589_v51 }
 0x32d   : > { %v1597_v31 = vmax.f32 %v1596_v12, 0.0 }
 0x32f   : > { %1909 = vmatmul.mubr.msk.f32.vlgmr.msra.gmra.mxu0 %vm1517_vm7, %v1597_v31 }
 0x3ef   : > { %v1680_v29 = vpop.f32.mrf.mxu0 }
 0x3f0   : > { %v1681_v42 = vadd.f32 %v1805_v36, %v1680_v29 }
 0x3f1   : > { %v1910_v18 = vpop.f32.mrf.mxu0 }
 0x3f2   : > { %1684 = vmax.xlane.f32.xlu0 %v1681_v42 }
 0x47b   : > { %v1685_v33 = vpop.xlane.xlu0 %1684 }
 0x47c   : > { %v1686_v41 = vsub.f32 %v1681_v42, %v1685_v33 }
 0x47e   : > { %v1687_v46 = vmul.f32 1.442695, %v1686_v41 }
 0x480   : > { %2172 = vpow2.f32 %v1687_v46 }
 0x48d   : > { %v2173_v55 = vpop.eup %2172 }
 0x48e   : > { %1689 = vadd.xlane.f32.xlu1 %v2173_v55 }
 0x517   : > { %v1690_v59 = vpop.xlane.xlu1 %1689 }
 0x518   : > { %2174 = vlog2.f32 %v1690_v59 }
 0x525   : > { %v2175_v26 = vpop.eup %2174 }
 0x526   : > { %v1692_v49 = vmul.f32 0.6931472, %v2175_v26 }
 0x528   : > { %v1693_v54 = vsub.f32 %v1686_v41, %v1692_v49 }
 0x52a   : > { %1694 = vst [vmem:[%s278_s29] sm:$0xff] %v1693_v54 }
 0x52b PF: > { %s17_s24 = sadd.s32 1, %s2182_s24  }
 0x52c   : > { %p14_p5 = scmp.ge.s32.totalorder %s17_s24, 4  }
 0x52e   :  { %16 = sbr.rel (!%p14_p5) target bundleno = 1 (0x1), region = 78 }

</bundles_post_ra>
